<compile_context>
chip_gen: v6e
topology: v6e:2x2x1
jax: 0.10.0
libtpu: 0.0.40
codegen_flags: <defaults>
</compile_context>

<pallas_src>
import functools

import jax
import jax.numpy as jnp
from jax.experimental import pallas as pl
from jax.experimental.pallas import tpu as pltpu


def _round_up(x, m):
    return (x + m - 1) // m * m


def _choose_tile(dim, t_max, align):
    """Tile size for `dim`: a multiple of `align`, <= t_max, preferring an
    exact divisor (no padding / no slice) and >= 2 grid blocks (v7x megacore).

    Returns (tile, grid, padded_dim)."""
    if dim % align == 0:
        best = None
        t = align
        while t <= min(dim, t_max):
            if dim % t == 0 and (best is None or dim // t >= 2):
                best = t
            t += align
        if best is not None:
            return best, dim // best, dim
    grid = -(-dim // t_max)
    t = _round_up(-(-dim // grid), align)
    return t, grid, t * grid


# ----------------------------------------------------------------------------
# Pallas kernels
# ----------------------------------------------------------------------------
def _mm_bias_act_kernel(x_ref, w_ref, b_ref, o_ref, *, act):
    """acc = x @ w (bf16 operands, f32 accumulate) + bias ; activation."""
    x = x_ref[...].astype(jnp.bfloat16)
    acc = jnp.dot(x, w_ref[...], preferred_element_type=jnp.float32)
    acc = acc + b_ref[...]                         # (1, tn) broadcasts over rows
    if act == "relu":
        acc = jnp.maximum(acc, 0.0)
    elif act == "sigmoid":
        acc = pl.reciprocal(1.0 + jnp.exp(-acc))   # exact: EUP exp + reciprocal
    o_ref[...] = acc.astype(o_ref.dtype)


def _bottleneck_kernel(x_ref, w3_ref, b3_ref, wd_ref, bd_ref, o_ref):
    """Fused enc3 + dec1: two back-to-back dots through the (N, 64) code."""
    x = x_ref[...].astype(jnp.bfloat16)
    enc = jnp.dot(x, w3_ref[...], preferred_element_type=jnp.float32)
    enc = enc + b3_ref[...]                        # encoder output, no activation
    d = jnp.dot(enc.astype(jnp.bfloat16), wd_ref[...],
                preferred_element_type=jnp.float32)
    d = jnp.maximum(d + bd_ref[...], 0.0)          # dec1 ReLU
    o_ref[...] = d.astype(o_ref.dtype)


# ----------------------------------------------------------------------------
# Pallas-call wrappers
# ----------------------------------------------------------------------------
def matmul_bias_act(x, w_p, b_p, n_out, act, *, tm_max=256, tn_max=2048):
    """x: (M, K) f32; w_p: (K, Np) bf16; b_p: (1, Np) f32 with Np % 128 == 0.

    Returns act(x @ w + b)[:, :n_out] as (M, n_out) f32."""
    M, K = x.shape
    Kw, Np = w_p.shape
    assert Kw == K and Np % 128 == 0 and b_p.shape == (1, Np)

    tm, grid_m, Mp = _choose_tile(M, tm_max, 8)
    tn, grid_n, _ = _choose_tile(Np, tn_max, 128)
    if Mp != M:                      # only for ragged M (e.g. tiny batch dims)
        x = jnp.pad(x, ((0, Mp - M), (0, 0)))

    out = pl.pallas_call(
        functools.partial(_mm_bias_act_kernel, act=act),
        out_shape=jax.ShapeDtypeStruct((Mp, Np), jnp.float32),
        grid=(grid_m, grid_n),
        in_specs=[
            pl.BlockSpec((tm, K), lambda i, j: (i, 0)),   # full-K block, no pad
            pl.BlockSpec((K, tn), lambda i, j: (0, j)),
            pl.BlockSpec((1, tn), lambda i, j: (0, j)),
        ],
        out_specs=pl.BlockSpec((tm, tn), lambda i, j: (i, j)),
        compiler_params=pltpu.CompilerParams(
            dimension_semantics=("parallel", "parallel")),
    )(x, w_p, b_p)
    if Mp != M or n_out != Np:
        out = out[:M, :n_out]
    return out


def bottleneck_fused(h_flat, w3_p, b3_p, wd_p, bd_p, n_out, *,
                     tm_max=256, tn_max=2048):
    """relu((h_flat @ w3 + b3) @ wd + bd) in one pallas_call (enc3 + dec1)."""
    M, K = h_flat.shape
    K3, mid = w3_p.shape
    midw, Nd = wd_p.shape
    assert K3 == K and midw == mid and Nd % 128 == 0 and n_out == Nd

    tm, grid_m, Mp = _choose_tile(M, tm_max, 8)
    tn, grid_n, _ = _choose_tile(Nd, tn_max, 128)
    if Mp != M:
        h_flat = jnp.pad(h_flat, ((0, Mp - M), (0, 0)))

    out = pl.pallas_call(
        _bottleneck_kernel,
        out_shape=jax.ShapeDtypeStruct((Mp, Nd), jnp.float32),
        grid=(grid_m, grid_n),
        in_specs=[
            pl.BlockSpec((tm, K), lambda i, j: (i, 0)),
            pl.BlockSpec((K, mid), lambda i, j: (0, 0)),    # VMEM-resident
            pl.BlockSpec((1, mid), lambda i, j: (0, 0)),
            pl.BlockSpec((mid, tn), lambda i, j: (0, j)),
            pl.BlockSpec((1, tn), lambda i, j: (0, j)),
        ],
        out_specs=pl.BlockSpec((tm, tn), lambda i, j: (i, j)),
        compiler_params=pltpu.CompilerParams(
            dimension_semantics=("parallel", "parallel")),
    )(h_flat, w3_p, b3_p, wd_p, bd_p)
    return out[:M] if Mp != M else out


# ----------------------------------------------------------------------------
# Conv / ConvTranspose lowering (NHWC glue in JAX, matmuls in Pallas)
# ----------------------------------------------------------------------------
def _im2col_nhwc(x, k, stride, pad):
    """(N,H,W,C) -> (N*OH*OW, k*k*C) patches; K flattened as (kh, kw, C)."""
    N, H, W, C = x.shape
    xp = jnp.pad(x, ((0, 0), (pad, pad), (pad, pad), (0, 0)))
    OH = (H + 2 * pad - k) // stride + 1
    OW = (W + 2 * pad - k) // stride + 1
    cols = []
    for kh in range(k):
        for kw in range(k):
            cols.append(
                xp[:, kh:kh + stride * OH:stride, kw:kw + stride * OW:stride, :])
    patches = jnp.stack(cols, axis=3).reshape(N * OH * OW, k * k * C)
    return patches, OH, OW


def conv2d_nhwc(x, w_p, b_p, n_out, *, k, stride, pad, act):
    # TODO(synk): fold im2col into the Pallas kernel (implicit GEMM) to drop
    # the remaining <=2.25x XLA-side patch materialization for enc1/enc2.
    N = x.shape[0]
    patches, OH, OW = _im2col_nhwc(x, k, stride, pad)
    out = matmul_bias_act(patches, w_p, b_p, n_out, act)
    return out.reshape(N, OH, OW, n_out)


def conv_transpose2x_subpixel(x, w_p, b_p, c_out, act):
    """ConvTranspose2d(k=3, stride=2, padding=1, output_padding=1) via the
    4-phase sub-pixel decomposition: a 2x2-tap stride-1 conv over the
    *undilated* input producing all 4 output phases, then an interleave."""
    N, H, W, C = x.shape
    xe = jnp.pad(x, ((0, 0), (0, 1), (0, 1), (0, 0)))      # bottom/right halo
    patches = jnp.concatenate(
        [xe[:, :H, :W, :], xe[:, :H, 1:, :],
         xe[:, 1:, :W, :], xe[:, 1:, 1:, :]], axis=-1)      # K order (di,dj,ci)
    out = matmul_bias_act(patches.reshape(N * H * W, 4 * C),
                          w_p, b_p, 4 * c_out, act)         # cols = (pi,pj,co)
    out = out.reshape(N, H, W, 2, 2, c_out)
    out = out.transpose(0, 1, 3, 2, 4, 5).reshape(N, 2 * H, 2 * W, c_out)
    return out


# ----------------------------------------------------------------------------
# Parameter init (PyTorch layout) and one-time matmul-ready packing
# ----------------------------------------------------------------------------
def init_params(key):
    """Deterministic PyTorch-style uniform(-1/sqrt(fan_in), 1/sqrt(fan_in))."""
    def uni(k, shape, fan_in):
        bound = 1.0 / jnp.sqrt(jnp.float32(fan_in))
        return jax.random.uniform(k, shape, jnp.float32, -bound, bound)

    keys = jax.random.split(key, 12)
    p = {}
    # Conv2d weights: (Cout, Cin, k, k), fan_in = Cin*k*k
    p["enc1_w"] = uni(keys[0], (16, 1, 3, 3), 1 * 3 * 3)
    p["enc1_b"] = uni(keys[1], (16,), 1 * 3 * 3)
    p["enc2_w"] = uni(keys[2], (32, 16, 3, 3), 16 * 3 * 3)
    p["enc2_b"] = uni(keys[3], (32,), 16 * 3 * 3)
    p["enc3_w"] = uni(keys[4], (64, 32, 10, 10), 32 * 10 * 10)
    p["enc3_b"] = uni(keys[5], (64,), 32 * 10 * 10)
    # ConvTranspose2d weights: (Cin, Cout, k, k), fan_in = Cout*k*k
    p["dec1_w"] = uni(keys[6], (64, 32, 10, 10), 32 * 10 * 10)
    p["dec1_b"] = uni(keys[7], (32,), 32 * 10 * 10)
    p["dec2_w"] = uni(keys[8], (32, 16, 3, 3), 16 * 3 * 3)
    p["dec2_b"] = uni(keys[9], (16,), 16 * 3 * 3)
    p["dec3_w"] = uni(keys[10], (16, 1, 3, 3), 1 * 3 * 3)
    p["dec3_b"] = uni(keys[11], (1,), 1 * 3 * 3)
    return p


def prepare_params(p):
    """Pack PyTorch-layout weights into matmul-ready bf16 matrices, ONCE,
    outside the jitted forward.  Only the N (output) dim is padded to 128."""
    def pack(wmat, b, pad_n=True):
        K, Nn = wmat.shape
        Np = _round_up(Nn, 128) if pad_n else Nn
        wp = jnp.pad(wmat, ((0, 0), (0, Np - Nn))).astype(jnp.bfloat16)
        bp = jnp.pad(b, (0, Np - Nn)).astype(jnp.float32).reshape(1, Np)
        return wp, bp

    def conv_wmat(w):                   # (Cout, Cin, k, k) -> (k*k*Cin, Cout)
        Cout, Cin, k, _ = w.shape
        return w.transpose(2, 3, 1, 0).reshape(k * k * Cin, Cout)

    def convT_subpixel_wmat(w_t):       # (Cin, Cout, 3, 3) -> (4*Cin, 4*Cout)
        Cin, Cout, k, _ = w_t.shape
        assert k == 3
        wc = jnp.zeros((2, 2, Cin, 2, 2, Cout), jnp.float32)
        for di in range(2):
            for dj in range(2):
                for pi in range(2):
                    for pj in range(2):
                        r = 1 + pi - 2 * di   # ConvTranspose spatial flip folded in
                        c = 1 + pj - 2 * dj
                        if 0 <= r <= 2 and 0 <= c <= 2:
                            wc = wc.at[di, dj, :, pi, pj, :].set(w_t[:, :, r, c])
        return wc.reshape(4 * Cin, 4 * Cout)

    q = {}
    q["enc1_w"], q["enc1_b"] = pack(conv_wmat(p["enc1_w"]), p["enc1_b"])
    q["enc2_w"], q["enc2_b"] = pack(conv_wmat(p["enc2_w"]), p["enc2_b"])
    # enc3: k=10 VALID conv on a 10x10 map == flatten + matmul.  Its output
    # (64-wide code) never touches HBM inside the fused bottleneck kernel, so
    # the mid dim stays unpadded.
    q["enc3_w"], q["enc3_b"] = pack(conv_wmat(p["enc3_w"]), p["enc3_b"],
                                    pad_n=False)
    # dec1: ConvTranspose2d(64->32, k=10) on a 1x1 map == dense matmul:
    #   out[n, i, j, co] = sum_ci x[n, ci] * w_t[ci, co, i, j] + b[co]
    w_t = p["dec1_w"]                                   # (64, 32, 10, 10)
    Cin, Cout, k, _ = w_t.shape
    dec1_mat = w_t.transpose(0, 2, 3, 1).reshape(Cin, k * k * Cout)
    q["dec1_w"], q["dec1_b"] = pack(dec1_mat, jnp.tile(p["dec1_b"], k * k))
    # dec2 / dec3: 4-phase sub-pixel packing (column order = (pi, pj, co)).
    q["dec2_w"], q["dec2_b"] = pack(convT_subpixel_wmat(p["dec2_w"]),
                                    jnp.tile(p["dec2_b"], 4))
    q["dec3_w"], q["dec3_b"] = pack(convT_subpixel_wmat(p["dec3_w"]),
                                    jnp.tile(p["dec3_b"], 4))
    return q


# ----------------------------------------------------------------------------
# Autoencoder forward (matches the PyTorch nn.Sequential layer-by-layer)
# ----------------------------------------------------------------------------
def autoencoder_forward(prepared, x_nchw):
    x = x_nchw.transpose(0, 2, 3, 1)                           # NCHW -> NHWC
    N = x.shape[0]

    # --- encoder ---
    h = conv2d_nhwc(x, prepared["enc1_w"], prepared["enc1_b"], 16,
                    k=3, stride=2, pad=1, act="relu")          # (N,20,20,16)
    h = conv2d_nhwc(h, prepared["enc2_w"], prepared["enc2_b"], 32,
                    k=3, stride=2, pad=1, act="relu")          # (N,10,10,32)
    _, H2, W2, C2 = h.shape
    assert (H2, W2) == (10, 10), "this script assumes 40x40 spatial inputs"

    # --- bottleneck: enc3 (Conv 32->64, k=10 VALID -> 1x1) fused with
    # dec1 (ConvT 64->32, k=10 on 1x1) in a single Pallas call. ---
    d1 = bottleneck_fused(h.reshape(N, H2 * W2 * C2),
                          prepared["enc3_w"], prepared["enc3_b"],
                          prepared["dec1_w"], prepared["dec1_b"],
                          32 * 10 * 10)                        # (N, 3200)
    h = d1.reshape(N, 10, 10, 32)

    # --- decoder tail (sub-pixel transposed convs) ---
    h = conv_transpose2x_subpixel(h, prepared["dec2_w"], prepared["dec2_b"],
                                  16, "relu")                  # (N,20,20,16)
    out = conv_transpose2x_subpixel(h, prepared["dec3_w"], prepared["dec3_b"],
                                    1, "sigmoid")              # (N,40,40,1)
    return out.transpose(0, 3, 1, 2)                           # NHWC -> NCHW


# ----------------------------------------------------------------------------
# Pure-XLA reference (PyTorch Conv/ConvTranspose semantics) for validation
# ----------------------------------------------------------------------------
def reference_forward(p, x):
    def conv(x, w, b, stride, pad):
        y = jax.lax.conv_general_dilated(
            x, w, window_strides=(stride, stride),
            padding=((pad, pad), (pad, pad)),
            dimension_numbers=("NCHW", "OIHW", "NCHW"))
        return y + b.reshape(1, -1, 1, 1)

    def convT(x, w_t, b, stride, pad, out_pad):
        k = w_t.shape[2]
        w = jnp.flip(w_t, (2, 3)).transpose(1, 0, 2, 3)        # (Cout,Cin,k,k)
        lo, hi = k - 1 - pad, k - 1 - pad + out_pad
        y = jax.lax.conv_general_dilated(
            x, w, window_strides=(1, 1), padding=((lo, hi), (lo, hi)),
            lhs_dilation=(stride, stride),
            dimension_numbers=("NCHW", "OIHW", "NCHW"))
        return y + b.reshape(1, -1, 1, 1)

    h = jax.nn.relu(conv(x, p["enc1_w"], p["enc1_b"], 2, 1))
    h = jax.nn.relu(conv(h, p["enc2_w"], p["enc2_b"], 2, 1))
    h = conv(h, p["enc3_w"], p["enc3_b"], 1, 0)
    h = jax.nn.relu(convT(h, p["dec1_w"], p["dec1_b"], 1, 0, 0))
    h = jax.nn.relu(convT(h, p["dec2_w"], p["dec2_b"], 2, 1, 1))
    return jax.nn.sigmoid(convT(h, p["dec3_w"], p["dec3_b"], 2, 1, 1))


if __name__ == "__main__":
    key = jax.random.PRNGKey(0)
    k_params, k_x = jax.random.split(key)
    params = init_params(k_params)
    prepared = prepare_params(params)   # one-time bf16 weight packing (no jit)

    # Smallest spatial size compatible with the 10x10 bottleneck conv: 40x40.
    x = jax.random.uniform(k_x, (2, 1, 40, 40), jnp.float32)

    fwd = jax.jit(autoencoder_forward)
    out = jax.block_until_ready(fwd(prepared, x))

    assert out.shape == (2, 1, 40, 40), out.shape
    assert out.dtype == jnp.float32
    assert bool(jnp.all(out >= 0.0)) and bool(jnp.all(out <= 1.0))  # sigmoid range

    # Numerical check vs. a pure-XLA reference using the same bf16-rounded
    # weights (the Pallas path accumulates in f32 from bf16 MXU operands).
    params_q = {k: (v.astype(jnp.bfloat16).astype(jnp.float32)
                    if k.endswith("_w") else v) for k, v in params.items()}
    ref = jax.block_until_ready(jax.jit(reference_forward)(params_q, x))
    max_err = float(jnp.max(jnp.abs(out - ref)))
    assert max_err < 3e-2, f"mismatch vs XLA reference: max|diff|={max_err}"
    print("KERNEL_OK")
</pallas_src>

<mosaic_0001>
module attributes {stable_mosaic.version = 11 : i64} {
  func.func @_mm_bias_act_kernel(%arg0: i32, %arg1: i32, %arg2: memref<200x9xf32, #tpu.memory_space<vmem>>, %arg3: memref<9x128xbf16, #tpu.memory_space<vmem>>, %arg4: memref<1x128xf32, #tpu.memory_space<vmem>>, %arg5: memref<200x128xf32, #tpu.memory_space<vmem>>) attributes {dimension_semantics = [#tpu.dimension_semantics<parallel>, #tpu.dimension_semantics<parallel>], iteration_bounds = array<i64: 4, 1>, scalar_prefetch = 0 : i64, scratch_operands = 0 : i64, tpu.core_type = #tpu.core_type<tc>, window_params = [{transform_indices = @transform_0, window_bounds = array<i64: 200, 9>}, {transform_indices = @transform_1, window_bounds = array<i64: 9, 128>}, {transform_indices = @transform_2, window_bounds = array<i64: 1, 128>}, {transform_indices = @transform_3, window_bounds = array<i64: 200, 128>}]} {
    %c0 = arith.constant 0 : index
    %c0_0 = arith.constant 0 : index
    %0 = vector.load %arg2[%c0, %c0_0] : memref<200x9xf32, #tpu.memory_space<vmem>>, vector<200x9xf32>
    %1 = arith.truncf %0 : vector<200x9xf32> to vector<200x9xbf16>
    %c0_1 = arith.constant 0 : index
    %c0_2 = arith.constant 0 : index
    %2 = vector.load %arg3[%c0_1, %c0_2] : memref<9x128xbf16, #tpu.memory_space<vmem>>, vector<9x128xbf16>
    %cst = arith.constant dense<0.000000e+00> : vector<200x128xf32>
    %3 = tpu.matmul %1, %2, %cst {dimension_numbers = #tpu.dot_dimension_numbers<[1], [0], [0], [1], [0, 0, 1, 1], [], []>} : vector<200x9xbf16>, vector<9x128xbf16>, vector<200x128xf32> -> vector<200x128xf32>
    %c0_3 = arith.constant 0 : index
    %c0_4 = arith.constant 0 : index
    %4 = vector.load %arg4[%c0_3, %c0_4] : memref<1x128xf32, #tpu.memory_space<vmem>>, vector<1x128xf32>
    %5 = vector.broadcast %4 : vector<1x128xf32> to vector<200x128xf32>
    %6 = arith.addf %3, %5 : vector<200x128xf32>
    %cst_5 = arith.constant 0.000000e+00 : f32
    %7 = vector.broadcast %cst_5 : f32 to vector<200x128xf32>
    %8 = arith.maximumf %6, %7 : vector<200x128xf32>
    %c0_6 = arith.constant 0 : index
    %c0_7 = arith.constant 0 : index
    %9 = vector.load %arg5[%c0_6, %c0_7] : memref<200x128xf32, #tpu.memory_space<vmem>>, vector<200x128xf32>
    tpu.vector_store %arg5[%c0_6, %c0_7], %8 {strides = array<i32>} : memref<200x128xf32, #tpu.memory_space<vmem>>, vector<200x128xf32>,
    return
  }
  func.func @transform_0(%arg0: i32, %arg1: i32) -> (i32, i32) {
    %c0_i32 = arith.constant 0 : i32
    %c0_i32_0 = arith.constant 0 : i32
    return %arg0, %c0_i32 : i32, i32
  }
  func.func @transform_1(%arg0: i32, %arg1: i32) -> (i32, i32) {
    %c0_i32 = arith.constant 0 : i32
    %c0_i32_0 = arith.constant 0 : i32
    return %c0_i32, %arg1 : i32, i32
  }
  func.func @transform_2(%arg0: i32, %arg1: i32) -> (i32, i32) {
    %c0_i32 = arith.constant 0 : i32
    %c0_i32_0 = arith.constant 0 : i32
    return %c0_i32, %arg1 : i32, i32
  }
  func.func @transform_3(%arg0: i32, %arg1: i32) -> (i32, i32) {
    %c0_i32 = arith.constant 0 : i32
    return %arg0, %arg1 : i32, i32
  }
}

module attributes {stable_mosaic.version = 11 : i64} {
  func.func @_mm_bias_act_kernel(%arg0: i32, %arg1: i32, %arg2: memref<40x144xf32, #tpu.memory_space<vmem>>, %arg3: memref<144x128xbf16, #tpu.memory_space<vmem>>, %arg4: memref<1x128xf32, #tpu.memory_space<vmem>>, %arg5: memref<40x128xf32, #tpu.memory_space<vmem>>) attributes {dimension_semantics = [#tpu.dimension_semantics<parallel>, #tpu.dimension_semantics<parallel>], iteration_bounds = array<i64: 5, 1>, scalar_prefetch = 0 : i64, scratch_operands = 0 : i64, tpu.core_type = #tpu.core_type<tc>, window_params = [{transform_indices = @transform_0, window_bounds = array<i64: 40, 144>}, {transform_indices = @transform_1, window_bounds = array<i64: 144, 128>}, {transform_indices = @transform_2, window_bounds = array<i64: 1, 128>}, {transform_indices = @transform_3, window_bounds = array<i64: 40, 128>}]} {
    %c0 = arith.constant 0 : index
    %c0_0 = arith.constant 0 : index
    %0 = vector.load %arg2[%c0, %c0_0] : memref<40x144xf32, #tpu.memory_space<vmem>>, vector<40x144xf32>
    %1 = arith.truncf %0 : vector<40x144xf32> to vector<40x144xbf16>
    %c0_1 = arith.constant 0 : index
    %c0_2 = arith.constant 0 : index
    %2 = vector.load %arg3[%c0_1, %c0_2] : memref<144x128xbf16, #tpu.memory_space<vmem>>, vector<144x128xbf16>
    %cst = arith.constant dense<0.000000e+00> : vector<40x128xf32>
    %3 = tpu.matmul %1, %2, %cst {dimension_numbers = #tpu.dot_dimension_numbers<[1], [0], [0], [1], [0, 0, 1, 1], [], []>} : vector<40x144xbf16>, vector<144x128xbf16>, vector<40x128xf32> -> vector<40x128xf32>
    %c0_3 = arith.constant 0 : index
    %c0_4 = arith.constant 0 : index
    %4 = vector.load %arg4[%c0_3, %c0_4] : memref<1x128xf32, #tpu.memory_space<vmem>>, vector<1x128xf32>
    %5 = vector.broadcast %4 : vector<1x128xf32> to vector<40x128xf32>
    %6 = arith.addf %3, %5 : vector<40x128xf32>
    %cst_5 = arith.constant 0.000000e+00 : f32
    %7 = vector.broadcast %cst_5 : f32 to vector<40x128xf32>
    %8 = arith.maximumf %6, %7 : vector<40x128xf32>
    %c0_6 = arith.constant 0 : index
    %c0_7 = arith.constant 0 : index
    %9 = vector.load %arg5[%c0_6, %c0_7] : memref<40x128xf32, #tpu.memory_space<vmem>>, vector<40x128xf32>
    tpu.vector_store %arg5[%c0_6, %c0_7], %8 {strides = array<i32>} : memref<40x128xf32, #tpu.memory_space<vmem>>, vector<40x128xf32>,
    return
  }
  func.func @transform_0(%arg0: i32, %arg1: i32) -> (i32, i32) {
    %c0_i32 = arith.constant 0 : i32
    %c0_i32_0 = arith.constant 0 : i32
    return %arg0, %c0_i32 : i32, i32
  }
  func.func @transform_1(%arg0: i32, %arg1: i32) -> (i32, i32) {
    %c0_i32 = arith.constant 0 : i32
    %c0_i32_0 = arith.constant 0 : i32
    return %c0_i32, %arg1 : i32, i32
  }
  func.func @transform_2(%arg0: i32, %arg1: i32) -> (i32, i32) {
    %c0_i32 = arith.constant 0 : i32
    %c0_i32_0 = arith.constant 0 : i32
    return %c0_i32, %arg1 : i32, i32
  }
  func.func @transform_3(%arg0: i32, %arg1: i32) -> (i32, i32) {
    %c0_i32 = arith.constant 0 : i32
    return %arg0, %arg1 : i32, i32
  }
}

module attributes {stable_mosaic.version = 11 : i64} {
  func.func @_bottleneck_kernel(%arg0: i32, %arg1: i32, %arg2: memref<8x3200xf32, #tpu.memory_space<vmem>>, %arg3: memref<3200x64xbf16, #tpu.memory_space<vmem>>, %arg4: memref<1x64xf32, #tpu.memory_space<vmem>>, %arg5: memref<64x640xbf16, #tpu.memory_space<vmem>>, %arg6: memref<1x640xf32, #tpu.memory_space<vmem>>, %arg7: memref<8x640xf32, #tpu.memory_space<vmem>>) attributes {dimension_semantics = [#tpu.dimension_semantics<parallel>, #tpu.dimension_semantics<parallel>], iteration_bounds = array<i64: 1, 5>, scalar_prefetch = 0 : i64, scratch_operands = 0 : i64, tpu.core_type = #tpu.core_type<tc>, window_params = [{transform_indices = @transform_0, window_bounds = array<i64: 8, 3200>}, {pipeline_mode = #tpu.pipeline_mode<synchronous>, transform_indices = @transform_1, window_bounds = array<i64: 3200, 64>}, {pipeline_mode = #tpu.pipeline_mode<synchronous>, transform_indices = @transform_2, window_bounds = array<i64: 1, 64>}, {transform_indices = @transform_3, window_bounds = array<i64: 64, 640>}, {transform_indices = @transform_4, window_bounds = array<i64: 1, 640>}, {transform_indices = @transform_5, window_bounds = array<i64: 8, 640>}]} {
    %c0 = arith.constant 0 : index
    %c0_0 = arith.constant 0 : index
    %0 = vector.load %arg2[%c0, %c0_0] : memref<8x3200xf32, #tpu.memory_space<vmem>>, vector<8x3200xf32>
    %1 = arith.truncf %0 : vector<8x3200xf32> to vector<8x3200xbf16>
    %c0_1 = arith.constant 0 : index
    %c0_2 = arith.constant 0 : index
    %2 = vector.load %arg3[%c0_1, %c0_2] : memref<3200x64xbf16, #tpu.memory_space<vmem>>, vector<3200x64xbf16>
    %cst = arith.constant dense<0.000000e+00> : vector<8x64xf32>
    %3 = tpu.matmul %1, %2, %cst {dimension_numbers = #tpu.dot_dimension_numbers<[1], [0], [0], [1], [0, 0, 1, 1], [], []>} : vector<8x3200xbf16>, vector<3200x64xbf16>, vector<8x64xf32> -> vector<8x64xf32>
    %c0_3 = arith.constant 0 : index
    %c0_4 = arith.constant 0 : index
    %4 = vector.load %arg4[%c0_3, %c0_4] : memref<1x64xf32, #tpu.memory_space<vmem>>, vector<1x64xf32>
    %5 = vector.broadcast %4 : vector<1x64xf32> to vector<8x64xf32>
    %6 = arith.addf %3, %5 : vector<8x64xf32>
    %7 = arith.truncf %6 : vector<8x64xf32> to vector<8x64xbf16>
    %c0_5 = arith.constant 0 : index
    %c0_6 = arith.constant 0 : index
    %8 = vector.load %arg5[%c0_5, %c0_6] : memref<64x640xbf16, #tpu.memory_space<vmem>>, vector<64x640xbf16>
    %cst_7 = arith.constant dense<0.000000e+00> : vector<8x640xf32>
    %9 = tpu.matmul %7, %8, %cst_7 {dimension_numbers = #tpu.dot_dimension_numbers<[1], [0], [0], [1], [0, 0, 1, 1], [], []>} : vector<8x64xbf16>, vector<64x640xbf16>, vector<8x640xf32> -> vector<8x640xf32>
    %c0_8 = arith.constant 0 : index
    %c0_9 = arith.constant 0 : index
    %10 = vector.load %arg6[%c0_8, %c0_9] : memref<1x640xf32, #tpu.memory_space<vmem>>, vector<1x640xf32>
    %11 = vector.broadcast %10 : vector<1x640xf32> to vector<8x640xf32>
    %12 = arith.addf %9, %11 : vector<8x640xf32>
    %cst_10 = arith.constant 0.000000e+00 : f32
    %13 = vector.broadcast %cst_10 : f32 to vector<8x640xf32>
    %14 = arith.maximumf %12, %13 : vector<8x640xf32>
    %c0_11 = arith.constant 0 : index
    %c0_12 = arith.constant 0 : index
    %15 = vector.load %arg7[%c0_11, %c0_12] : memref<8x640xf32, #tpu.memory_space<vmem>>, vector<8x640xf32>
    tpu.vector_store %arg7[%c0_11, %c0_12], %14 {strides = array<i32>} : memref<8x640xf32, #tpu.memory_space<vmem>>, vector<8x640xf32>,
    return
  }
  func.func @transform_0(%arg0: i32, %arg1: i32) -> (i32, i32) {
    %c0_i32 = arith.constant 0 : i32
    %c0_i32_0 = arith.constant 0 : i32
    return %arg0, %c0_i32 : i32, i32
  }
  func.func @transform_1(%arg0: i32, %arg1: i32) -> (i32, i32) {
    %c0_i32 = arith.constant 0 : i32
    %c0_i32_0 = arith.constant 0 : i32
    %c0_i32_1 = arith.constant 0 : i32
    return %c0_i32, %c0_i32_0 : i32, i32
  }
  func.func @transform_2(%arg0: i32, %arg1: i32) -> (i32, i32) {
    %c0_i32 = arith.constant 0 : i32
    %c0_i32_0 = arith.constant 0 : i32
    %c0_i32_1 = arith.constant 0 : i32
    return %c0_i32, %c0_i32_0 : i32, i32
  }
  func.func @transform_3(%arg0: i32, %arg1: i32) -> (i32, i32) {
    %c0_i32 = arith.constant 0 : i32
    %c0_i32_0 = arith.constant 0 : i32
    return %c0_i32, %arg1 : i32, i32
  }
  func.func @transform_4(%arg0: i32, %arg1: i32) -> (i32, i32) {
    %c0_i32 = arith.constant 0 : i32
    %c0_i32_0 = arith.constant 0 : i32
    return %c0_i32, %arg1 : i32, i32
  }
  func.func @transform_5(%arg0: i32, %arg1: i32) -> (i32, i32) {
    %c0_i32 = arith.constant 0 : i32
    return %arg0, %arg1 : i32, i32
  }
}

module attributes {stable_mosaic.version = 11 : i64} {
  func.func @_mm_bias_act_kernel(%arg0: i32, %arg1: i32, %arg2: memref<40x128xf32, #tpu.memory_space<vmem>>, %arg3: memref<128x128xbf16, #tpu.memory_space<vmem>>, %arg4: memref<1x128xf32, #tpu.memory_space<vmem>>, %arg5: memref<40x128xf32, #tpu.memory_space<vmem>>) attributes {dimension_semantics = [#tpu.dimension_semantics<parallel>, #tpu.dimension_semantics<parallel>], iteration_bounds = array<i64: 5, 1>, scalar_prefetch = 0 : i64, scratch_operands = 0 : i64, tpu.core_type = #tpu.core_type<tc>, window_params = [{transform_indices = @transform_0, window_bounds = array<i64: 40, 128>}, {transform_indices = @transform_1, window_bounds = array<i64: 128, 128>}, {transform_indices = @transform_2, window_bounds = array<i64: 1, 128>}, {transform_indices = @transform_3, window_bounds = array<i64: 40, 128>}]} {
    %c0 = arith.constant 0 : index
    %c0_0 = arith.constant 0 : index
    %0 = vector.load %arg2[%c0, %c0_0] : memref<40x128xf32, #tpu.memory_space<vmem>>, vector<40x128xf32>
    %1 = arith.truncf %0 : vector<40x128xf32> to vector<40x128xbf16>
    %c0_1 = arith.constant 0 : index
    %c0_2 = arith.constant 0 : index
    %2 = vector.load %arg3[%c0_1, %c0_2] : memref<128x128xbf16, #tpu.memory_space<vmem>>, vector<128x128xbf16>
    %cst = arith.constant dense<0.000000e+00> : vector<40x128xf32>
    %3 = tpu.matmul %1, %2, %cst {dimension_numbers = #tpu.dot_dimension_numbers<[1], [0], [0], [1], [0, 0, 1, 1], [], []>} : vector<40x128xbf16>, vector<128x128xbf16>, vector<40x128xf32> -> vector<40x128xf32>
    %c0_3 = arith.constant 0 : index
    %c0_4 = arith.constant 0 : index
    %4 = vector.load %arg4[%c0_3, %c0_4] : memref<1x128xf32, #tpu.memory_space<vmem>>, vector<1x128xf32>
    %5 = vector.broadcast %4 : vector<1x128xf32> to vector<40x128xf32>
    %6 = arith.addf %3, %5 : vector<40x128xf32>
    %cst_5 = arith.constant 0.000000e+00 : f32
    %7 = vector.broadcast %cst_5 : f32 to vector<40x128xf32>
    %8 = arith.maximumf %6, %7 : vector<40x128xf32>
    %c0_6 = arith.constant 0 : index
    %c0_7 = arith.constant 0 : index
    %9 = vector.load %arg5[%c0_6, %c0_7] : memref<40x128xf32, #tpu.memory_space<vmem>>, vector<40x128xf32>
    tpu.vector_store %arg5[%c0_6, %c0_7], %8 {strides = array<i32>} : memref<40x128xf32, #tpu.memory_space<vmem>>, vector<40x128xf32>,
    return
  }
  func.func @transform_0(%arg0: i32, %arg1: i32) -> (i32, i32) {
    %c0_i32 = arith.constant 0 : i32
    %c0_i32_0 = arith.constant 0 : i32
    return %arg0, %c0_i32 : i32, i32
  }
  func.func @transform_1(%arg0: i32, %arg1: i32) -> (i32, i32) {
    %c0_i32 = arith.constant 0 : i32
    %c0_i32_0 = arith.constant 0 : i32
    return %c0_i32, %arg1 : i32, i32
  }
  func.func @transform_2(%arg0: i32, %arg1: i32) -> (i32, i32) {
    %c0_i32 = arith.constant 0 : i32
    %c0_i32_0 = arith.constant 0 : i32
    return %c0_i32, %arg1 : i32, i32
  }
  func.func @transform_3(%arg0: i32, %arg1: i32) -> (i32, i32) {
    %c0_i32 = arith.constant 0 : i32
    return %arg0, %arg1 : i32, i32
  }
}

module attributes {stable_mosaic.version = 11 : i64} {
  func.func @_mm_bias_act_kernel(%arg0: i32, %arg1: i32, %arg2: memref<200x64xf32, #tpu.memory_space<vmem>>, %arg3: memref<64x128xbf16, #tpu.memory_space<vmem>>, %arg4: memref<1x128xf32, #tpu.memory_space<vmem>>, %arg5: memref<200x128xf32, #tpu.memory_space<vmem>>) attributes {dimension_semantics = [#tpu.dimension_semantics<parallel>, #tpu.dimension_semantics<parallel>], iteration_bounds = array<i64: 4, 1>, scalar_prefetch = 0 : i64, scratch_operands = 0 : i64, tpu.core_type = #tpu.core_type<tc>, window_params = [{transform_indices = @transform_0, window_bounds = array<i64: 200, 64>}, {transform_indices = @transform_1, window_bounds = array<i64: 64, 128>}, {transform_indices = @transform_2, window_bounds = array<i64: 1, 128>}, {transform_indices = @transform_3, window_bounds = array<i64: 200, 128>}]} {
    %c0 = arith.constant 0 : index
    %c0_0 = arith.constant 0 : index
    %0 = vector.load %arg2[%c0, %c0_0] : memref<200x64xf32, #tpu.memory_space<vmem>>, vector<200x64xf32>
    %1 = arith.truncf %0 : vector<200x64xf32> to vector<200x64xbf16>
    %c0_1 = arith.constant 0 : index
    %c0_2 = arith.constant 0 : index
    %2 = vector.load %arg3[%c0_1, %c0_2] : memref<64x128xbf16, #tpu.memory_space<vmem>>, vector<64x128xbf16>
    %cst = arith.constant dense<0.000000e+00> : vector<200x128xf32>
    %3 = tpu.matmul %1, %2, %cst {dimension_numbers = #tpu.dot_dimension_numbers<[1], [0], [0], [1], [0, 0, 1, 1], [], []>} : vector<200x64xbf16>, vector<64x128xbf16>, vector<200x128xf32> -> vector<200x128xf32>
    %c0_3 = arith.constant 0 : index
    %c0_4 = arith.constant 0 : index
    %4 = vector.load %arg4[%c0_3, %c0_4] : memref<1x128xf32, #tpu.memory_space<vmem>>, vector<1x128xf32>
    %5 = vector.broadcast %4 : vector<1x128xf32> to vector<200x128xf32>
    %6 = arith.addf %3, %5 : vector<200x128xf32>
    %cst_5 = arith.constant 0.000000e+00 : f32
    %7 = vector.broadcast %cst_5 : f32 to vector<200x128xf32>
    %8 = arith.subf %7, %6 : vector<200x128xf32>
    %9 = math.exp %8 : vector<200x128xf32>
    %cst_6 = arith.constant 1.000000e+00 : f32
    %10 = vector.broadcast %cst_6 : f32 to vector<200x128xf32>
    %11 = arith.addf %10, %9 : vector<200x128xf32>
    %12 = tpu.reciprocal %11 : vector<200x128xf32> -> vector<200x128xf32>
    %c0_7 = arith.constant 0 : index
    %c0_8 = arith.constant 0 : index
    %13 = vector.load %arg5[%c0_7, %c0_8] : memref<200x128xf32, #tpu.memory_space<vmem>>, vector<200x128xf32>
    tpu.vector_store %arg5[%c0_7, %c0_8], %12 {strides = array<i32>} : memref<200x128xf32, #tpu.memory_space<vmem>>, vector<200x128xf32>,
    return
  }
  func.func @transform_0(%arg0: i32, %arg1: i32) -> (i32, i32) {
    %c0_i32 = arith.constant 0 : i32
    %c0_i32_0 = arith.constant 0 : i32
    return %arg0, %c0_i32 : i32, i32
  }
  func.func @transform_1(%arg0: i32, %arg1: i32) -> (i32, i32) {
    %c0_i32 = arith.constant 0 : i32
    %c0_i32_0 = arith.constant 0 : i32
    return %c0_i32, %arg1 : i32, i32
  }
  func.func @transform_2(%arg0: i32, %arg1: i32) -> (i32, i32) {
    %c0_i32 = arith.constant 0 : i32
    %c0_i32_0 = arith.constant 0 : i32
    return %c0_i32, %arg1 : i32, i32
  }
  func.func @transform_3(%arg0: i32, %arg1: i32) -> (i32, i32) {
    %c0_i32 = arith.constant 0 : i32
    return %arg0, %arg1 : i32, i32
  }
}

</mosaic_0001>

<bundles_post_ra>
// kernel: autoencoder_forward.5
= control target key start
LH: loop header
LB: loop body
LE: loop exit
PB: predicated region body
PF: predicated region fallthrough
CT: control target
= control target key end

     0   :  { %8 = vsyncpa [#allocation3], 0  ;;  %s1093_s0 = inlined_call_operand.vmem [shape: f32[800,9], index: 0, kind: input, shape index: {}]   ;;  %s1094_s1 = inlined_call_operand.hbm [shape: bf16[9,128], index: 1, kind: input, shape index: {}]   ;;  %s1095_s2 = inlined_call_operand.hbm [shape: f32[1,128], index: 2, kind: input, shape index: {}]   ;;  %s1096_s3 = inlined_call_operand.vmem [shape: f32[800,128], index: 3, kind: output, shape index: {}]  }
   0x1   :  { %9 = vsyncpa [#allocation5], 0  ;;  %s883_s12 = smov 0   ;;  %s885_s13 = smov 0  }
   0x2   :  { %s887_s14 = smov 0  }
   0x3 LB: > { %s623_s15 = sadd.s32 4294967295, %s854_s14   ;;  %s27_s16 = sadd.s32 1, %s850_s13  ;;  %s854_s14 = sphi %s887_s14, %s15_s14   ;;  %s850_s13 = sphi %s885_s13, %s1101_s13   ;;  %s846_s12 = sphi %s883_s12, %s1100_s12  }
   0x4   : > { %p29_p0 = scmp.ge.s32.totalorder %s27_s16, 4  ;;  %p625_p1 = scmp.ge.s32.totalorder %s854_s14, 1 }
   0x5   : > { %p138_p2 = scmp.lt.s32.totalorder %s854_s14, 5  ;;  %p908_p4 = scmp.eq.s32.totalorder %s623_s15, 0 }
   0x6   : > { %s1103_s16 = smov (%p29_p0, %s27_s16), 0  ;;  %s856_s19 = smov [#allocation2]  }
   0x7   : > { %p904_p3 = pnand %p625_p1, %p138_p2  ;;  %s152_s20 = sshll.u32 %s856_s19, 4  ;;  %s153_s20 = int_to_ptr.vmem [resolvable:$true] %s152_s20 }
   0x8   : > { %s857_s22 = smov [#allocation4]   ;;  %s783_s24 = scalar_lea.vmem %s153_s20, 128 }
   0x9   : > { %p729_p5 = pneg %p904_p3  ;;  %s168_s23 = sshll.u32 %s857_s22, 4  ;;  %s169_s23 = int_to_ptr.vmem [resolvable:$true] %s168_s23 }
   0xa   : > { %p784_p8 = scmp.ne.s32.totalorder %s153_s20, %s783_s24  ;;  %p791_p11 = scmp.lt.s32.totalorder %s153_s20, %s153_s20 }
   0xb   : > { %p916_p6 = pnand %p908_p4, %p729_p5  ;;  %p792_p12 = scmp.lt.s32.totalorder %s783_s24, %s783_s24 }
   0xd   : > { %p774_p7 = pneg %p916_p6  ;;  %p793_p13 = por %p792_p12, %p791_p11 }
   0xf   : > { %p786_p9 = pnand %p784_p8, %p774_p7 }
  0x11   : > { %p787_p10 = pneg %p786_p9 }
  0x13   : > { %p794_p0 = pnand %p793_p13, %p787_p10 }
  0x15   : > { %797 = shalt.err (!%p794_p0)
}
  0x16   : > { %s858_s25 = smov 64   ;;  %s859_s26 = smov 4  }
  0x17   : > { %732 = dma.hbm_to_vmem [thread:$0]  (!%p916_p6), %s1094_s1, 128, %s153_s20, [#allocation3], %s858_s25, %s858_s25, %s859_s26  }
  0x18   : > { %s809_s29 = scalar_lea.vmem %s169_s23, 16  ;;  %s816_s30 = scalar_lea.vmem %s169_s23, 32 }
  0x19   : > { %p810_p1 = scmp.ne.s32.totalorder %s169_s23, %s809_s29  ;;  %p817_p8 = scmp.lt.s32.totalorder %s169_s23, %s169_s23 }
  0x1a   : > { %p818_p9 = scmp.lt.s32.totalorder %s816_s30, %s809_s29 }
  0x1b   : > { %p812_p2 = pnand %p810_p1, %p774_p7 }
  0x1c   : > { %p819_p10 = por %p818_p9, %p817_p8 }
  0x1d   : > { %p813_p5 = pneg %p812_p2 }
  0x1f   : > { %p820_p11 = pnand %p819_p10, %p813_p5 }
  0x21   : > { %823 = shalt.err (!%p820_p11)
}
  0x22   : > { %735 = dma.hbm_to_vmem [thread:$0]  (!%p916_p6), %s1095_s2, 16, %s169_s23, [#allocation5]  }
  0x23   : > { %190 = sbr.rel (%p904_p3) target bundleno = 303 (0x12f), region = 32 }
  0x28   : > { %837 = dma.done.wait (%p908_p4), [#allocation3], 128  }
  0x29   : > { %839 = vsyncadd (%p908_p4), [#allocation3], 4294967168 }
  0x2a   : > { %841 = dma.done.wait (%p908_p4), [#allocation5], 16  }
  0x2b   : > { %843 = vsyncadd (%p908_p4), [#allocation5], 4294967280  ;;  %vm329_vm0 = vcmask 1043456   ;;  %v860_v0 = vmov 0.0   ;;  %s221_s6 = smul.u32 25, %s846_s12  ;;  %vm861_vm1 = vmmov 0  }
  0x2c   : > { %665 = vmatprep.subr.bf16.mxu0 %v860_v0  ;;  %719 = vmatprep.subr.bf16.mxu1 %v860_v0  ;;  %vm330_vm2 = vcmask 1044480   ;;  %v862_v1 = vmov 65535   ;;  %v771_v4 = vld [vmem:[#allocation2] sm:$0x1f]   ;;  %vm289_vm3 = vcmask 72704  }
  0x2d   : > { %667 = vmatprep.mubr.msk.bf16.mxu0 %vm861_vm1, %v860_v0  ;;  %695 = vmatprep.mubr.msk.bf16.mxu1 %vm861_vm1, %v860_v0  ;;  %v331_v2 = vsel %vm329_vm0, 4294967295, %v862_v1  ;;  %p222_p3 = scmp.lt.s32.totalorder %s221_s6, 99  ;;  %v1025_v44 = vld [vmem:[#allocation4] ss:$0 sm:$0xff] }
  0x2e   : > { %v332_v3 = vsel %vm330_vm2, %v331_v2, 0 }
  0x2f   : > { %s1105_s6 = smov (!%p222_p3, %s221_s6), 99  ;;  %v334_v5 = vand.u32 %v771_v4, %v332_v3 }
  0x30   : > { %s632_s7 = sshll.u32 %s1105_s6, 3 }
  0x31   : > { %s963_s10 = scalar_lea.vmem %s1093_s0, %s632_s7  ;;  %666 = vmatpush3.bf16.msra.mxu0 %v334_v5  ;;  %720 = vmatpush3.bf16.msra.mxu1 %v334_v5  ;;  %s1034_s15 = scalar_lea.vmem %s1096_s3, %s632_s7 }
  0x32   : > { %v237_v6 = vld [vmem:[%s963_s10] sm:$0xff]  ;;  %v238_v7 = vld [vmem:[%s963_s10 + $0x8] sm:$0xff]  ;;  %v251_v8 = vld [vmem:[%s963_s10 + $0x70] sm:$0xff] }
  0x33   : > { %v262_v9 = vpack.c.bf16 %v238_v7, %v237_v6  ;;  %v252_v10 = vld [vmem:[%s963_s10 + $0x78] sm:$0xff]  ;;  %v239_v12 = vld [vmem:[%s963_s10 + $0x10] sm:$0xff]  ;;  %v253_v14 = vld [vmem:[%s963_s10 + $0x80] sm:$0xff] }
  0x34   : > { %v269_v11 = vpack.c.bf16 %v252_v10, %v251_v8  ;;  %v240_v13 = vld [vmem:[%s963_s10 + $0x18] sm:$0xff]  ;;  %v254_v15 = vld [vmem:[%s963_s10 + $0x88] sm:$0xff]  ;;  %v241_v18 = vld [vmem:[%s963_s10 + $0x20] sm:$0xff] }
  0x35   : > { %668 = vmatmul.mubr.msk.bf16.vlgmr.msra.gmra.mxu0 %vm289_vm3, %v262_v9  ;;  %v263_v16 = vpack.c.bf16 %v240_v13, %v239_v12  ;;  %v270_v17 = vpack.c.bf16 %v254_v15, %v253_v14  ;;  %v242_v19 = vld [vmem:[%s963_s10 + $0x28] sm:$0xff]  ;;  %v255_v20 = vld [vmem:[%s963_s10 + $0x90] sm:$0xff]  ;;  %v256_v21 = vld [vmem:[%s963_s10 + $0x98] sm:$0xff] }
  0x36   : > { %696 = vmatmul.mubr.msk.bf16.vlgmr.msra.gmra.mxu1 %vm289_vm3, %v269_v11  ;;  %671 = vmatprep.mubr.msk.bf16.mxu0 %vm861_vm1, %v860_v0  ;;  %v264_v22 = vpack.c.bf16 %v242_v19, %v241_v18  ;;  %v271_v23 = vpack.c.bf16 %v256_v21, %v255_v20  ;;  %v243_v24 = vld [vmem:[%s963_s10 + $0x30] sm:$0xff]  ;;  %v244_v25 = vld [vmem:[%s963_s10 + $0x38] sm:$0xff]  ;;  %v257_v26 = vld [vmem:[%s963_s10 + $0xa0] sm:$0xff] }
  0x37   : > { %699 = vmatprep.mubr.msk.bf16.mxu1 %vm861_vm1, %v860_v0  ;;  %v258_v27 = vld [vmem:[%s963_s10 + $0xa8] sm:$0xff]  ;;  %v265_v28 = vpack.c.bf16 %v244_v25, %v243_v24  ;;  %v245_v30 = vld [vmem:[%s963_s10 + $0x40] sm:$0xff]  ;;  %v259_v32 = vld [vmem:[%s963_s10 + $0xb0] sm:$0xff] }
  0x38   : > { %v272_v29 = vpack.c.bf16 %v258_v27, %v257_v26  ;;  %v246_v31 = vld [vmem:[%s963_s10 + $0x48] sm:$0xff]  ;;  %v260_v33 = vld [vmem:[%s963_s10 + $0xb8] sm:$0xff]  ;;  %v247_v36 = vld [vmem:[%s963_s10 + $0x50] sm:$0xff] }
  0x39   : > { %v266_v34 = vpack.c.bf16 %v246_v31, %v245_v30  ;;  %v273_v35 = vpack.c.bf16 %v260_v33, %v259_v32  ;;  %v248_v37 = vld [vmem:[%s963_s10 + $0x58] sm:$0xff]  ;;  %v261_v38 = vld [vmem:[%s963_s10 + $0xc0] sm:$0xff]  ;;  %v250_v42 = vld [vmem:[%s963_s10 + $0x68] sm:$0xff] }
  0x3a   : > { %v267_v39 = vpack.c.bf16 %v248_v37, %v247_v36  ;;  %v274_v40 = vpack.c.bf16 %v261_v38, %v261_v38  ;;  %v249_v41 = vld [vmem:[%s963_s10 + $0x60] sm:$0xff] }
  0x3b   : > { %v268_v43 = vpack.c.bf16 %v250_v42, %v249_v41 }
  0x3d   : > { %672 = vmatmul.mubr.msk.bf16.gmra.mxu0 %vm289_vm3, %v263_v16 }
  0x3e   : > { %700 = vmatmul.mubr.msk.bf16.gmra.mxu1 %vm289_vm3, %v270_v17  ;;  %675 = vmatprep.mubr.msk.bf16.mxu0 %vm861_vm1, %v860_v0 }
  0x3f   : > { %703 = vmatprep.mubr.msk.bf16.mxu1 %vm861_vm1, %v860_v0 }
  0x45   : > { %676 = vmatmul.mubr.msk.bf16.gmra.mxu0 %vm289_vm3, %v264_v22 }
  0x46   : > { %704 = vmatmul.mubr.msk.bf16.gmra.mxu1 %vm289_vm3, %v271_v23  ;;  %679 = vmatprep.mubr.msk.bf16.mxu0 %vm861_vm1, %v860_v0 }
  0x47   : > { %707 = vmatprep.mubr.msk.bf16.mxu1 %vm861_vm1, %v860_v0 }
  0x4d   : > { %680 = vmatmul.mubr.msk.bf16.gmra.mxu0 %vm289_vm3, %v265_v28 }
  0x4e   : > { %708 = vmatmul.mubr.msk.bf16.gmra.mxu1 %vm289_vm3, %v272_v29  ;;  %683 = vmatprep.mubr.msk.bf16.mxu0 %vm861_vm1, %v860_v0 }
  0x4f   : > { %711 = vmatprep.mubr.msk.bf16.mxu1 %vm861_vm1, %v860_v0 }
  0x55   : > { %684 = vmatmul.mubr.msk.bf16.gmra.mxu0 %vm289_vm3, %v266_v34 }
  0x56   : > { %712 = vmatmul.mubr.msk.bf16.gmra.mxu1 %vm289_vm3, %v273_v35  ;;  %687 = vmatprep.mubr.msk.bf16.mxu0 %vm861_vm1, %v860_v0 }
  0x57   : > { %715 = vmatprep.mubr.msk.bf16.mxu1 %vm861_vm1, %v860_v0 }
  0x5d   : > { %688 = vmatmul.mubr.msk.bf16.gmra.mxu0 %vm289_vm3, %v267_v39 }
  0x5e   : > { %716 = vmatmul.mubr.msk.bf16.gmra.mxu1 %vm289_vm3, %v274_v40  ;;  %691 = vmatprep.mubr.msk.bf16.mxu0 %vm861_vm1, %v860_v0 }
  0x65   : > { %692 = vmatmul.mubr.msk.bf16.gmra.mxu0 %vm289_vm3, %v268_v43 }
  0xf5   : > { %v370_v45 = vpop.f32.mrf.mxu0 }
  0xf6   : > { %v426_v46 = vpop.f32.mrf.mxu1  ;;  %v371_v47 = vadd.f32 %v1025_v44, %v370_v45 }
  0xf7   : > { %v427_v48 = vadd.f32 %v1025_v44, %v426_v46  ;;  %v669_v49 = vpop.f32.mrf.mxu0 }
  0xf8   : > { %v697_v50 = vpop.f32.mrf.mxu1  ;;  %v472_v51 = vmax.f32 %v371_v47, 0.0 }
  0xf9   : > { %v486_v52 = vmax.f32 %v427_v48, 0.0  ;;  %v373_v53 = vpop.f32.mrf.mxu0 }
  0xfa   : > { %v429_v54 = vpop.f32.mrf.mxu1  ;;  %497 = vst [vmem:[%s1034_s15] sm:$0xff] %v472_v51  ;;  %v374_v55 = vadd.f32 %v1025_v44, %v373_v53 }
  0xfb   : > { %511 = vst [vmem:[%s1034_s15 + $0x70] sm:$0xff] %v486_v52  ;;  %v430_v56 = vadd.f32 %v1025_v44, %v429_v54  ;;  %v670_v57 = vpop.f32.mrf.mxu0 }
  0xfc   : > { %v698_v58 = vpop.f32.mrf.mxu1  ;;  %v473_v59 = vmax.f32 %v374_v55, 0.0 }
  0xfd   : > { %v487_v60 = vmax.f32 %v430_v56, 0.0  ;;  %v378_v61 = vpop.f32.mrf.mxu0 }
  0xfe   : > { %v434_v62 = vpop.f32.mrf.mxu1  ;;  %498 = vst [vmem:[%s1034_s15 + $0x8] sm:$0xff] %v473_v59  ;;  %v379_v63 = vadd.f32 %v1025_v44, %v378_v61 }
  0xff   : > { %512 = vst [vmem:[%s1034_s15 + $0x78] sm:$0xff] %v487_v60  ;;  %v435_v0 = vadd.f32 %v1025_v44, %v434_v62  ;;  %v673_v1 = vpop.f32.mrf.mxu0 }
 0x100   : > { %v701_v2 = vpop.f32.mrf.mxu1  ;;  %v474_v3 = vmax.f32 %v379_v63, 0.0 }
 0x101   : > { %v488_v4 = vmax.f32 %v435_v0, 0.0  ;;  %v381_v5 = vpop.f32.mrf.mxu0 }
 0x102   : > { %v437_v6 = vpop.f32.mrf.mxu1  ;;  %499 = vst [vmem:[%s1034_s15 + $0x10] sm:$0xff] %v474_v3  ;;  %v382_v7 = vadd.f32 %v1025_v44, %v381_v5 }
 0x103   : > { %513 = vst [vmem:[%s1034_s15 + $0x80] sm:$0xff] %v488_v4  ;;  %v438_v8 = vadd.f32 %v1025_v44, %v437_v6  ;;  %v674_v9 = vpop.f32.mrf.mxu0 }
 0x104   : > { %v702_v10 = vpop.f32.mrf.mxu1  ;;  %v475_v11 = vmax.f32 %v382_v7, 0.0 }
 0x105   : > { %v489_v12 = vmax.f32 %v438_v8, 0.0  ;;  %v386_v13 = vpop.f32.mrf.mxu0 }
 0x106   : > { %v442_v14 = vpop.f32.mrf.mxu1  ;;  %500 = vst [vmem:[%s1034_s15 + $0x18] sm:$0xff] %v475_v11  ;;  %v387_v15 = vadd.f32 %v1025_v44, %v386_v13 }
 0x107   : > { %514 = vst [vmem:[%s1034_s15 + $0x88] sm:$0xff] %v489_v12  ;;  %v443_v16 = vadd.f32 %v1025_v44, %v442_v14  ;;  %v677_v17 = vpop.f32.mrf.mxu0 }
 0x108   : > { %v705_v18 = vpop.f32.mrf.mxu1  ;;  %v476_v19 = vmax.f32 %v387_v15, 0.0 }
 0x109   : > { %v490_v20 = vmax.f32 %v443_v16, 0.0  ;;  %v389_v21 = vpop.f32.mrf.mxu0 }
 0x10a   : > { %v445_v22 = vpop.f32.mrf.mxu1  ;;  %501 = vst [vmem:[%s1034_s15 + $0x20] sm:$0xff] %v476_v19  ;;  %v390_v23 = vadd.f32 %v1025_v44, %v389_v21 }
 0x10b   : > { %515 = vst [vmem:[%s1034_s15 + $0x90] sm:$0xff] %v490_v20  ;;  %v446_v24 = vadd.f32 %v1025_v44, %v445_v22  ;;  %v678_v25 = vpop.f32.mrf.mxu0 }
 0x10c   : > { %v706_v26 = vpop.f32.mrf.mxu1  ;;  %v477_v27 = vmax.f32 %v390_v23, 0.0 }
 0x10d   : > { %v491_v28 = vmax.f32 %v446_v24, 0.0  ;;  %v394_v29 = vpop.f32.mrf.mxu0 }
 0x10e   : > { %v450_v30 = vpop.f32.mrf.mxu1  ;;  %502 = vst [vmem:[%s1034_s15 + $0x28] sm:$0xff] %v477_v27  ;;  %v395_v31 = vadd.f32 %v1025_v44, %v394_v29 }
 0x10f   : > { %516 = vst [vmem:[%s1034_s15 + $0x98] sm:$0xff] %v491_v28  ;;  %v451_v32 = vadd.f32 %v1025_v44, %v450_v30  ;;  %v681_v33 = vpop.f32.mrf.mxu0 }
 0x110   : > { %v709_v34 = vpop.f32.mrf.mxu1  ;;  %v478_v35 = vmax.f32 %v395_v31, 0.0 }
 0x111   : > { %v492_v36 = vmax.f32 %v451_v32, 0.0  ;;  %v397_v37 = vpop.f32.mrf.mxu0 }
 0x112   : > { %v453_v38 = vpop.f32.mrf.mxu1  ;;  %503 = vst [vmem:[%s1034_s15 + $0x30] sm:$0xff] %v478_v35  ;;  %v398_v39 = vadd.f32 %v1025_v44, %v397_v37 }
 0x113   : > { %517 = vst [vmem:[%s1034_s15 + $0xa0] sm:$0xff] %v492_v36  ;;  %v454_v40 = vadd.f32 %v1025_v44, %v453_v38  ;;  %v682_v41 = vpop.f32.mrf.mxu0 }
 0x114   : > { %v710_v42 = vpop.f32.mrf.mxu1  ;;  %v479_v43 = vmax.f32 %v398_v39, 0.0 }
 0x115   : > { %v493_v45 = vmax.f32 %v454_v40, 0.0  ;;  %v402_v46 = vpop.f32.mrf.mxu0 }
 0x116   : > { %v458_v47 = vpop.f32.mrf.mxu1  ;;  %504 = vst [vmem:[%s1034_s15 + $0x38] sm:$0xff] %v479_v43  ;;  %v403_v48 = vadd.f32 %v1025_v44, %v402_v46 }
 0x117   : > { %518 = vst [vmem:[%s1034_s15 + $0xa8] sm:$0xff] %v493_v45  ;;  %v459_v49 = vadd.f32 %v1025_v44, %v458_v47  ;;  %v685_v50 = vpop.f32.mrf.mxu0 }
 0x118   : > { %v713_v51 = vpop.f32.mrf.mxu1  ;;  %v480_v52 = vmax.f32 %v403_v48, 0.0 }
 0x119   : > { %v494_v53 = vmax.f32 %v459_v49, 0.0  ;;  %v405_v54 = vpop.f32.mrf.mxu0 }
 0x11a   : > { %v461_v55 = vpop.f32.mrf.mxu1  ;;  %505 = vst [vmem:[%s1034_s15 + $0x40] sm:$0xff] %v480_v52  ;;  %v406_v56 = vadd.f32 %v1025_v44, %v405_v54 }
 0x11b   : > { %519 = vst [vmem:[%s1034_s15 + $0xb0] sm:$0xff] %v494_v53  ;;  %v462_v57 = vadd.f32 %v1025_v44, %v461_v55  ;;  %v686_v58 = vpop.f32.mrf.mxu0 }
 0x11c   : > { %v714_v59 = vpop.f32.mrf.mxu1  ;;  %v481_v60 = vmax.f32 %v406_v56, 0.0 }
 0x11d   : > { %v495_v61 = vmax.f32 %v462_v57, 0.0  ;;  %v410_v62 = vpop.f32.mrf.mxu0 }
 0x11e   : > { %v466_v63 = vpop.f32.mrf.mxu1  ;;  %506 = vst [vmem:[%s1034_s15 + $0x48] sm:$0xff] %v481_v60  ;;  %v411_v0 = vadd.f32 %v1025_v44, %v410_v62 }
 0x11f   : > { %520 = vst [vmem:[%s1034_s15 + $0xb8] sm:$0xff] %v495_v61  ;;  %v467_v1 = vadd.f32 %v1025_v44, %v466_v63  ;;  %v689_v2 = vpop.f32.mrf.mxu0 }
 0x120   : > { %v717_v3 = vpop.f32.mrf.mxu1  ;;  %v482_v4 = vmax.f32 %v411_v0, 0.0 }
 0x121   : > { %v496_v5 = vmax.f32 %v467_v1, 0.0  ;;  %v413_v6 = vpop.f32.mrf.mxu0 }
 0x122   : > { %v469_v7 = vpop.f32.mrf.mxu1  ;;  %507 = vst [vmem:[%s1034_s15 + $0x50] sm:$0xff] %v482_v4  ;;  %v414_v8 = vadd.f32 %v1025_v44, %v413_v6 }
 0x123   : > { %521 = vst [vmem:[%s1034_s15 + $0xc0] sm:$0xff] %v496_v5  ;;  %v690_v9 = vpop.f32.mrf.mxu0 }
 0x124   : > { %v718_v10 = vpop.f32.mrf.mxu1  ;;  %v483_v11 = vmax.f32 %v414_v8, 0.0 }
 0x125   : > { %v418_v12 = vpop.f32.mrf.mxu0 }
 0x126   : > { %508 = vst [vmem:[%s1034_s15 + $0x58] sm:$0xff] %v483_v11  ;;  %v419_v13 = vadd.f32 %v1025_v44, %v418_v12 }
 0x127   : > { %v693_v14 = vpop.f32.mrf.mxu0 }
 0x128   : > { %v484_v15 = vmax.f32 %v419_v13, 0.0 }
 0x129   : > { %v421_v16 = vpop.f32.mrf.mxu0 }
 0x12a   : > { %509 = vst [vmem:[%s1034_s15 + $0x60] sm:$0xff] %v484_v15  ;;  %v422_v17 = vadd.f32 %v1025_v44, %v421_v16 }
 0x12b   : > { %v694_v18 = vpop.f32.mrf.mxu0 }
 0x12c   : > { %v485_v19 = vmax.f32 %v422_v17, 0.0 }
 0x12e   : > { %510 = vst [vmem:[%s1034_s15 + $0x68] sm:$0xff] %v485_v19 }
 0x12f PF: > { %s15_s14 = sadd.s32 1, %s854_s14   ;;  %s1100_s12 = smov %s850_s13 }
 0x130   : > { %p12_p4 = scmp.ge.s32.totalorder %s15_s14, 6   ;;  %s1101_s13 = smov %s1103_s16 }
 0x132   :  { %14 = sbr.rel (!%p12_p4) target bundleno = 3 (0x3), region = 73 }
 0x137   :  { %550 = vsyncpa [#allocation3], 1 }
 0x138   :  { %552 = vsyncpa [#allocation3 + $0x1], 1 }
 0x139   :  { %553 = vsyncpa [#allocation5], 1 }

// kernel: autoencoder_forward.6
= control target key start
LH: loop header
LB: loop body
LE: loop exit
PB: predicated region body
PF: predicated region fallthrough
CT: control target
= control target key end

     0   :  { %s625_s12 = smov 0   ;;  %s627_s13 = smov 0   ;;  %s707_s0 = inlined_call_operand.vmem [shape: f32[200,144], index: 0, kind: input, shape index: {}]   ;;  %s708_s1 = inlined_call_operand.vmem [shape: bf16[144,128], index: 1, kind: input, shape index: {}]   ;;  %s709_s2 = inlined_call_operand.vmem [shape: f32[1,128], index: 2, kind: input, shape index: {}]   ;;  %s710_s3 = inlined_call_operand.vmem [shape: f32[200,128], index: 3, kind: output, shape index: {}]  }
   0x1   :  { %s629_s14 = smov 0  }
   0x2 LB: > { %s25_s15 = sadd.s32 1, %s598_s13  ;;  %p508_p0 = scmp.ge.s32.totalorder %s602_s14, 1  ;;  %s602_s14 = sphi %s629_s14, %s13_s14   ;;  %s598_s13 = sphi %s627_s13, %s712_s13   ;;  %s594_s12 = sphi %s625_s12, %s711_s12  }
   0x3   : > { %p27_p1 = scmp.ge.s32.totalorder %s25_s15, 5  ;;  %p170_p2 = scmp.lt.s32.totalorder %s602_s14, 6 }
   0x5   : > { %s714_s15 = smov (%p27_p1, %s25_s15), 0  ;;  %p171_p3 = pnand %p508_p0, %p170_p2 }
   0x6   : > { %s205_s18 = smul.u32 (!%p171_p3), 5, %s594_s12 }
   0x7   : > { %174 = sbr.rel (%p171_p3) target bundleno = 256 (0x100), region = 32 }
   0x8   : > { %p206_p4 = scmp.lt.s32.totalorder (!%p171_p3), %s205_s18, 24 }
   0xc   : > { %v571_v0 = vld [vmem:[%s708_s1 + $0x38] sm:$0xff]   ;;  %v604_v1 = vmov 0   ;;  %v572_v2 = vld [vmem:[%s708_s1 + $0x30] sm:$0xff]   ;;  %s716_s18 = smov (!%p206_p4, %s205_s18), 24  ;;  %v573_v3 = vld [vmem:[%s708_s1 + $0x28] sm:$0xff]   ;;  %vm324_vm0 = vcmask 130048  }
   0xd   : > { %334 = vmatprep.subr.bf16.mxu0 %v604_v1  ;;  %528 = vmatprep.subr.bf16.mxu1 %v604_v1  ;;  %s527_s23 = sshll.u32 %s716_s18, 4  ;;  %v574_v7 = vld [vmem:[%s708_s1 + $0x20] sm:$0xff]   ;;  %v575_v11 = vld [vmem:[%s708_s1 + $0x18] sm:$0xff]   ;;  %v576_v12 = vld [vmem:[%s708_s1 + $0x10] sm:$0xff]   ;;  %s511_s17 = sshll.u32 %s716_s18, 3 }
   0xe   : > { %335 = vmatpush1.bf16.msra.mxu0 %v571_v0  ;;  %537 = vmatpush1.bf16.msra.mxu1 %v571_v0  ;;  %s658_s26 = scalar_lea.vmem %s707_s0, %s527_s23  ;;  %v577_v13 = vld [vmem:[%s708_s1 + $0x8] sm:$0xff]   ;;  %v578_v14 = vld [vmem:[%s708_s1] sm:$0xff]   ;;  %s226_s21 = scalar_lea.vmem %s710_s3, %s511_s17 }
   0xf   : > { %336 = vmatprep.subr.bf16.mxu0 %v604_v1  ;;  %529 = vmatprep.subr.bf16.mxu1 %v604_v1  ;;  %v230_v4 = vld [vmem:[%s658_s26 + $0x8] sm:$0xff]  ;;  %v232_v5 = vld [vmem:[%s658_s26 + $0x18] sm:$0xff]  ;;  %v579_v15 = vld [vmem:[%s708_s1 + $0x40] sm:$0xff]  }
  0x10   : > { %v234_v6 = vld [vmem:[%s658_s26 + $0x28] sm:$0xff]  ;;  %v240_v8 = vpack.c.bf16 %v232_v5, %v230_v4  ;;  %v236_v9 = vld [vmem:[%s658_s26 + $0x38] sm:$0xff]  ;;  %v229_v16 = vld [vmem:[%s658_s26] sm:$0xff] }
  0x11   : > { %v242_v10 = vpack.c.bf16 %v236_v9, %v234_v6  ;;  %v231_v17 = vld [vmem:[%s658_s26 + $0x10] sm:$0xff]  ;;  %v233_v18 = vld [vmem:[%s658_s26 + $0x20] sm:$0xff]  ;;  %v238_v20 = vld [vmem:[%s658_s26 + $0x48] sm:$0xff] }
  0x12   : > { %337 = vmatpush1.bf16.msra.mxu0 %v572_v2  ;;  %538 = vmatpush1.bf16.msra.mxu1 %v572_v2  ;;  %v235_v19 = vld [vmem:[%s658_s26 + $0x30] sm:$0xff]  ;;  %v239_v21 = vpack.c.bf16 %v231_v17, %v229_v16  ;;  %v244_v23 = vpack.c.bf16 %v238_v20, %v238_v20  ;;  %v237_v24 = vld [vmem:[%s658_s26 + $0x40] sm:$0xff] }
  0x13   : > { %338 = vmatprep.subr.bf16.mxu0 %v604_v1  ;;  %530 = vmatprep.subr.bf16.mxu1 %v604_v1  ;;  %v241_v22 = vpack.c.bf16 %v235_v19, %v233_v18  ;;  %v243_v25 = vpack.c.bf16 %v237_v24, %v237_v24  ;;  %v512_v26 = vld [vmem:[%s709_s2] ss:$0 sm:$0xff] }
  0x14   : > { %522 = vmatprep.mubr.msk.bf16.mxu0 %vm324_vm0, %v240_v8  ;;  %523 = vmatprep.mubr.msk.bf16.mxu1 %vm324_vm0, %v242_v10 }
  0x16   : > { %339 = vmatpush1.bf16.msra.mxu0 %v573_v3  ;;  %539 = vmatpush1.bf16.msra.mxu1 %v573_v3 }
  0x17   : > { %340 = vmatprep.subr.bf16.mxu0 %v604_v1  ;;  %531 = vmatprep.subr.bf16.mxu1 %v604_v1 }
  0x1a   : > { %341 = vmatpush1.bf16.msra.mxu0 %v574_v7  ;;  %540 = vmatpush1.bf16.msra.mxu1 %v574_v7 }
  0x1b   : > { %342 = vmatprep.subr.bf16.mxu0 %v604_v1  ;;  %532 = vmatprep.subr.bf16.mxu1 %v604_v1 }
  0x1e   : > { %343 = vmatpush1.bf16.msra.mxu0 %v575_v11  ;;  %541 = vmatpush1.bf16.msra.mxu1 %v575_v11 }
  0x1f   : > { %344 = vmatprep.subr.bf16.mxu0 %v604_v1  ;;  %533 = vmatprep.subr.bf16.mxu1 %v604_v1 }
  0x22   : > { %345 = vmatpush1.bf16.msra.mxu0 %v576_v12  ;;  %542 = vmatpush1.bf16.msra.mxu1 %v576_v12 }
  0x23   : > { %346 = vmatprep.subr.bf16.mxu0 %v604_v1  ;;  %534 = vmatprep.subr.bf16.mxu1 %v604_v1 }
  0x26   : > { %347 = vmatpush1.bf16.msra.mxu0 %v577_v13  ;;  %543 = vmatpush1.bf16.msra.mxu1 %v577_v13 }
  0x27   : > { %348 = vmatprep.subr.bf16.mxu0 %v604_v1  ;;  %535 = vmatprep.subr.bf16.mxu1 %v604_v1 }
  0x2a   : > { %349 = vmatpush1.bf16.msra.mxu0 %v578_v14  ;;  %544 = vmatpush1.bf16.msra.mxu1 %v578_v14 }
  0x2b   : > { %364 = vmatprep.subr.bf16.mxu0 %v604_v1  ;;  %536 = vmatprep.subr.bf16.mxu1 %v604_v1 }
  0x2e   : > { %365 = vmatpush2.bf16.msra.mxu0 %v579_v15  ;;  %545 = vmatpush2.bf16.msra.mxu1 %v579_v15 }
  0x31   : > { %367 = vmatmul.mubr.bf16.vlgmr.msra.gmra.mxu0 %v239_v21  ;;  %375 = vmatmul.mubr.bf16.vlgmr.msra.gmra.mxu1 %v241_v22 }
  0x32   : > { %524 = vmatprep.mubr.msk.bf16.mxu1 %vm324_vm0, %v244_v23 }
  0x39   : > { %383 = vmatmul.mubr.bf16.gmra.mxu1 %v243_v25 }
  0xf1   : > { %v368_v27 = vpop.f32.mrf.mxu0  ;;  %v376_v28 = vpop.f32.mrf.mxu1 }
  0xf2   : > { %v369_v29 = vadd.f32 %v512_v26, %v368_v27  ;;  %v377_v30 = vadd.f32 %v512_v26, %v376_v28 }
  0xf3   : > { %v370_v31 = vpop.f32.mrf.mxu0  ;;  %v378_v32 = vpop.f32.mrf.mxu1 }
  0xf4   : > { %v390_v33 = vmax.f32 %v369_v29, 0.0  ;;  %v392_v34 = vmax.f32 %v377_v30, 0.0 }
  0xf5   : > { %v371_v35 = vpop.f32.mrf.mxu0  ;;  %v379_v36 = vpop.f32.mrf.mxu1 }
  0xf6   : > { %395 = vst [vmem:[%s226_s21] sm:$0xff] %v390_v33  ;;  %397 = vst [vmem:[%s226_s21 + $0x10] sm:$0xff] %v392_v34  ;;  %v372_v37 = vadd.f32 %v512_v26, %v371_v35  ;;  %v380_v38 = vadd.f32 %v512_v26, %v379_v36 }
  0xf7   : > { %v373_v39 = vpop.f32.mrf.mxu0  ;;  %v381_v40 = vpop.f32.mrf.mxu1 }
  0xf8   : > { %v391_v41 = vmax.f32 %v372_v37, 0.0  ;;  %v393_v42 = vmax.f32 %v380_v38, 0.0 }
  0xf9   : > { %v384_v43 = vpop.f32.mrf.mxu1 }
  0xfa   : > { %396 = vst [vmem:[%s226_s21 + $0x8] sm:$0xff] %v391_v41  ;;  %398 = vst [vmem:[%s226_s21 + $0x18] sm:$0xff] %v393_v42  ;;  %v385_v44 = vadd.f32 %v512_v26, %v384_v43 }
  0xfb   : > { %v386_v45 = vpop.f32.mrf.mxu1 }
  0xfc   : > { %v394_v46 = vmax.f32 %v385_v44, 0.0 }
  0xfd   : > { %v387_v47 = vpop.f32.mrf.mxu1 }
  0xfe   : > { %399 = vst [vmem:[%s226_s21 + $0x20] sm:$0xff] %v394_v46 }
  0xff   : > { %v388_v48 = vpop.f32.mrf.mxu1 }
 0x100 PF: > { %s13_s14 = sadd.s32 1, %s602_s14   ;;  %s711_s12 = smov %s598_s13 }
 0x101   : > { %p10_p5 = scmp.ge.s32.totalorder %s13_s14, 7   ;;  %s712_s13 = smov %s714_s15 }
 0x103   :  { %12 = sbr.rel (!%p10_p5) target bundleno = 2 (0x2), region = 68 }

// kernel: autoencoder_forward.7
= control target key start
LH: loop header
LB: loop body
LE: loop exit
PB: predicated region body
PF: predicated region fallthrough
CT: control target
= control target key end

     0   :  { %s3856_s18 = smov 0   ;;  %s3858_s19 = smov 0   ;;  %s4695_s0 = inlined_call_operand.vmem [shape: f32[8,3200], index: 0, kind: input, shape index: {}]   ;;  %s4696_s1 = inlined_call_operand.vmem [shape: bf16[3200,64], index: 1, kind: input, shape index: {}]   ;;  %s4697_s2 = inlined_call_operand.vmem [shape: f32[1,64], index: 2, kind: input, shape index: {}]   ;;  %s4698_s3 = inlined_call_operand.vmem [shape: bf16[64,3200], index: 3, kind: input, shape index: {}]   ;;  %s4699_s4 = inlined_call_operand.vmem [shape: f32[1,3200], index: 4, kind: input, shape index: {}]   ;;  %s4700_s5 = inlined_call_operand.vmem [shape: f32[8,3200], index: 5, kind: output, shape index: {}]  }
   0x1   :  { %s3860_s20 = smov 0   ;;  %s3862_s21 = smov 0  }
   0x2   :  { %s3864_s22 = smov 0  }
   0x3 LB: > { %s24_s23 = sadd.s32 1, %s3817_s21  ;;  %p109_p1 = scmp.ne.s32.totalorder %s3809_s19, %s3805_s18  ;;  %s3821_s22 = sphi %s3864_s22, %s15_s22   ;;  %s3817_s21 = sphi %s3862_s21, %s4704_s21   ;;  %s3813_s20 = sphi %s3860_s20, %s4703_s20   ;;  %s3809_s19 = sphi %s3858_s19, %s4702_s19   ;;  %s3805_s18 = sphi %s3856_s18, %s4701_s18  }
   0x4   : > { %p25_p0 = scmp.ge.s32.totalorder %s24_s23, 5  ;;  %p110_p2 = scmp.eq.s32.totalorder %s3821_s22, 0 }
   0x5   : > { %s102_s25 = sadd.s32 1, %s3809_s19  ;;  %p2953_p5 = scmp.ge.s32.totalorder %s3821_s22, 5 }
   0x6   : > { %s4706_s23 = smov (%p25_p0, %s24_s23), 0  ;;  %p111_p3 = por %p110_p2, %p109_p1 }
   0x7   : > { %s99_s24 = ssub.s32 %s3817_s21, %s4706_s23  ;;  %203 = sbr.rel (%p2953_p5) target bundleno = 30 (0x1e), region = 28 }
   0x8   : > { %p100_p4 = scmp.eq.s32.totalorder %s99_s24, 0 }
   0xa   : > { %s3891_s26 = scalar_select %p100_p4, %s3809_s19, %s102_s25  }
   0xc   : > { %206 = sbr.rel (!%p111_p3) target bundleno = 30 (0x1e), region = 32  ;;  %s208_s27 = sand.u32 (%p111_p3), 1, %s3809_s19  }
   0xd   : > { %s3199_s28 = smul.u32 (%p111_p3), 20, %s3817_s21 }
   0xe   : > { %s3510_s29 = smul.u32 (%p111_p3), 160, %s208_s27 }
   0xf   : > { %s3899_s7 = scalar_lea.vmem (%p111_p3), %s4698_s3, %s3199_s28 }
  0x10   : > { %v228_v0 = vld [vmem:[%s3899_s7] sm:$0xff] (%p111_p3)  ;;  %v230_v1 = vld [vmem:[%s3899_s7 + $0x8] sm:$0xff] (%p111_p3)  ;;  %s3904_s8 = scalar_lea.vmem (%p111_p3), [#allocation2], %s3510_s29  ;;  %v238_v5 = vld [vmem:[%s3899_s7 + $0xd0] sm:$0xff] (%p111_p3) }
  0x11   : > { %v232_v2 = vld [vmem:[%s3899_s7 + $0x64] sm:$0xff]  ;;  %229 = vst [vmem:[%s3904_s8] sm:$0xff] %v228_v0  ;;  %231 = vst [vmem:[%s3904_s8 + $0x8] sm:$0xff] %v230_v1  ;;  %v234_v3 = vld [vmem:[%s3899_s7 + $0x6c] sm:$0xff] }
  0x12   : > { %233 = vst [vmem:[%s3904_s8 + $0x14] sm:$0xff] %v232_v2  ;;  %v236_v4 = vld [vmem:[%s3899_s7 + $0xc8] sm:$0xff]  ;;  %235 = vst [vmem:[%s3904_s8 + $0x1c] sm:$0xff] %v234_v3  ;;  %v242_v7 = vld [vmem:[%s3899_s7 + $0x134] sm:$0xff] }
  0x13   : > { %237 = vst [vmem:[%s3904_s8 + $0x28] sm:$0xff] %v236_v4  ;;  %239 = vst [vmem:[%s3904_s8 + $0x30] sm:$0xff] %v238_v5  ;;  %v240_v6 = vld [vmem:[%s3899_s7 + $0x12c] sm:$0xff]  ;;  %v246_v9 = vld [vmem:[%s3899_s7 + $0x198] sm:$0xff] }
  0x14   : > { %v244_v8 = vld [vmem:[%s3899_s7 + $0x190] sm:$0xff]  ;;  %241 = vst [vmem:[%s3904_s8 + $0x3c] sm:$0xff] %v240_v6  ;;  %243 = vst [vmem:[%s3904_s8 + $0x44] sm:$0xff] %v242_v7  ;;  %v250_v11 = vld [vmem:[%s3899_s7 + $0x1fc] sm:$0xff] }
  0x15   : > { %245 = vst [vmem:[%s3904_s8 + $0x50] sm:$0xff] %v244_v8  ;;  %v248_v10 = vld [vmem:[%s3899_s7 + $0x1f4] sm:$0xff]  ;;  %247 = vst [vmem:[%s3904_s8 + $0x58] sm:$0xff] %v246_v9  ;;  %v254_v13 = vld [vmem:[%s3899_s7 + $0x260] sm:$0xff] }
  0x16   : > { %249 = vst [vmem:[%s3904_s8 + $0x64] sm:$0xff] %v248_v10  ;;  %251 = vst [vmem:[%s3904_s8 + $0x6c] sm:$0xff] %v250_v11  ;;  %v252_v12 = vld [vmem:[%s3899_s7 + $0x258] sm:$0xff]  ;;  %v258_v15 = vld [vmem:[%s3899_s7 + $0x2c4] sm:$0xff] }
  0x17   : > { %v256_v14 = vld [vmem:[%s3899_s7 + $0x2bc] sm:$0xff]  ;;  %253 = vst [vmem:[%s3904_s8 + $0x78] sm:$0xff] %v252_v12  ;;  %255 = vst [vmem:[%s3904_s8 + $0x80] sm:$0xff] %v254_v13  ;;  %v2955_v16 = vld [vmem:[%s3899_s7 + $0x10] sm:$0xf] }
  0x18   : > { %257 = vst [vmem:[%s3904_s8 + $0x8c] sm:$0xff] %v256_v14  ;;  %v2957_v17 = vld [vmem:[%s3899_s7 + $0x74] sm:$0xf]  ;;  %259 = vst [vmem:[%s3904_s8 + $0x94] sm:$0xff] %v258_v15  ;;  %v2959_v18 = vld [vmem:[%s3899_s7 + $0xd8] sm:$0xf] }
  0x19   : > { %2956 = vst [vmem:[%s3904_s8 + $0x10] sm:$0xf] %v2955_v16  ;;  %2958 = vst [vmem:[%s3904_s8 + $0x24] sm:$0xf] %v2957_v17  ;;  %v2961_v19 = vld [vmem:[%s3899_s7 + $0x13c] sm:$0xf] }
  0x1a   : > { %v2963_v20 = vld [vmem:[%s3899_s7 + $0x1a0] sm:$0xf]  ;;  %2960 = vst [vmem:[%s3904_s8 + $0x38] sm:$0xf] %v2959_v18  ;;  %2962 = vst [vmem:[%s3904_s8 + $0x4c] sm:$0xf] %v2961_v19 }
  0x1b   : > { %2964 = vst [vmem:[%s3904_s8 + $0x60] sm:$0xf] %v2963_v20  ;;  %v2965_v21 = vld [vmem:[%s3899_s7 + $0x204] sm:$0xf]  ;;  %v2967_v22 = vld [vmem:[%s3899_s7 + $0x268] sm:$0xf] }
  0x1c   : > { %v2969_v23 = vld [vmem:[%s3899_s7 + $0x2cc] sm:$0xf]  ;;  %2966 = vst [vmem:[%s3904_s8 + $0x74] sm:$0xf] %v2965_v21  ;;  %2968 = vst [vmem:[%s3904_s8 + $0x88] sm:$0xf] %v2967_v22 }
  0x1d   : > { %2970 = vst [vmem:[%s3904_s8 + $0x9c] sm:$0xf] %v2969_v23 }
  0x1e PF: > { %p2971_p6 = scmp.ge.s32.totalorder %s3821_s22, 1  ;;  %p296_p7 = scmp.lt.s32.totalorder %s3821_s22, 6 }
  0x20   : > { %p297_p8 = pnand %p2971_p6, %p296_p7 }
  0x21   : > { %s303_s11 = sand.u32 (!%p297_p8), 1, %s3805_s18   ;;  %s349_s18 = smul.u32 (!%p297_p8), 5, %s3813_s20 }
  0x22   : > { %300 = sbr.rel (%p297_p8) target bundleno = 677 (0x2a5), region = 62 }
  0x23   : > { %s3511_s12 = smul.u32 (!%p297_p8), 160, %s303_s11  ;;  %p350_p9 = scmp.lt.s32.totalorder (!%p297_p8), %s349_s18, 24 }
  0x25   : > { %s4645_s13 = scalar_lea.vmem (!%p297_p8), [#allocation2], %s3511_s12 }
  0x27   : > { %v3555_v24 = vld [vmem:[%s4696_s1 + $0x78] sm:$0xff]   ;;  %v3559_v28 = vld [vmem:[%s4696_s1 + $0x70] sm:$0xff]   ;;  %v3563_v32 = vld [vmem:[%s4696_s1 + $0x68] sm:$0xff]   ;;  %vm3824_vm0 = vmmov 0   ;;  %vm2698_vm1 = vcmask 523264   ;;  %s4708_s18 = smov (!%p350_p9, %s349_s18), 24 }
  0x28   : > { %v3556_v25 = vld [vmem:[%s4696_s1 + $0x38] sm:$0xff]   ;;  %3200 = vmatprep.subr.bf16.mxu0 %v3555_v24  ;;  %v3560_v29 = vld [vmem:[%s4696_s1 + $0x30] sm:$0xff]   ;;  %v3564_v33 = vld [vmem:[%s4696_s1 + $0x28] sm:$0xff]   ;;  %s352_s16 = scalar_lea.vmem %s4699_s4, %s4708_s18  ;;  %s2972_s17 = sshll.u32 %s4708_s18, 3 }
  0x29   : > { %v3557_v26 = vld [vmem:[%s4696_s1 + $0xf8] sm:$0xff]   ;;  %3201 = vmatpush3.bf16.msra.mxu0 %v3556_v25  ;;  %v3561_v30 = vld [vmem:[%s4696_s1 + $0xf0] sm:$0xff]   ;;  %v3565_v34 = vld [vmem:[%s4696_s1 + $0xe8] sm:$0xff]   ;;  %s362_s25 = scalar_lea.vmem %s4700_s5, %s2972_s17 }
  0x2a   : > { %v3558_v27 = vld [vmem:[%s4696_s1 + $0xb8] sm:$0xff]   ;;  %3222 = vmatprep.subr.bf16.mxu1 %v3557_v26  ;;  %3202 = vmatprep.subr.bf16.mxu0 %v3559_v28  ;;  %v3562_v31 = vld [vmem:[%s4696_s1 + $0xb0] sm:$0xff]   ;;  %v3566_v35 = vld [vmem:[%s4696_s1 + $0xa8] sm:$0xff]  }
  0x2b   : > { %3223 = vmatpush3.bf16.msra.mxu1 %v3558_v27  ;;  %v3567_v36 = vld [vmem:[%s4696_s1 + $0x60] sm:$0xff]   ;;  %v3571_v40 = vld [vmem:[%s4696_s1 + $0x58] sm:$0xff]   ;;  %v3575_v44 = vld [vmem:[%s4696_s1 + $0x50] sm:$0xff]  }
  0x2c   : > { %3224 = vmatprep.subr.bf16.mxu1 %v3561_v30  ;;  %v3568_v37 = vld [vmem:[%s4696_s1 + $0x20] sm:$0xff]   ;;  %v3572_v41 = vld [vmem:[%s4696_s1 + $0x18] sm:$0xff]   ;;  %v3576_v45 = vld [vmem:[%s4696_s1 + $0x10] sm:$0xff]  }
  0x2d   : > { %3203 = vmatpush3.bf16.msra.mxu0 %v3560_v29  ;;  %v3569_v38 = vld [vmem:[%s4696_s1 + $0xe0] sm:$0xff]   ;;  %v3573_v42 = vld [vmem:[%s4696_s1 + $0xd8] sm:$0xff]   ;;  %v3577_v46 = vld [vmem:[%s4696_s1 + $0xd0] sm:$0xff]  }
  0x2e   : > { %3204 = vmatprep.subr.bf16.mxu0 %v3563_v32  ;;  %v3570_v39 = vld [vmem:[%s4696_s1 + $0xa0] sm:$0xff]   ;;  %v3574_v43 = vld [vmem:[%s4696_s1 + $0x98] sm:$0xff]   ;;  %v3578_v47 = vld [vmem:[%s4696_s1 + $0x90] sm:$0xff]  }
  0x2f   : > { %3225 = vmatpush3.bf16.msra.mxu1 %v3562_v31  ;;  %v3579_v48 = vld [vmem:[%s4696_s1 + $0x48] sm:$0xff]   ;;  %v3583_v52 = vld [vmem:[%s4696_s1 + $0x40] sm:$0xff]   ;;  %v3587_v60 = vld [vmem:[%s4696_s1 + $0x178] sm:$0xff]  }
  0x30   : > { %3226 = vmatprep.subr.bf16.mxu1 %v3565_v34  ;;  %v3580_v49 = vld [vmem:[%s4696_s1 + $0x8] sm:$0xff]   ;;  %v3584_v53 = vld [vmem:[%s4696_s1] sm:$0xff]   ;;  %v368_v61 = vld [vmem:[%s4695_s0 + $0x18] sm:$0xff] }
  0x31   : > { %3205 = vmatpush3.bf16.msra.mxu0 %v3564_v33  ;;  %v3581_v50 = vld [vmem:[%s4696_s1 + $0xc8] sm:$0xff]   ;;  %v3585_v54 = vld [vmem:[%s4696_s1 + $0xc0] sm:$0xff]   ;;  %v393_v62 = vpack.c.bf16 %v368_v61, %v368_v61  ;;  %v3588_v63 = vld [vmem:[%s4696_s1 + $0x138] sm:$0xff]  }
  0x32   : > { %3206 = vmatprep.subr.bf16.mxu0 %v3567_v36  ;;  %v3582_v51 = vld [vmem:[%s4696_s1 + $0x88] sm:$0xff]   ;;  %v3586_v57 = vld [vmem:[%s4696_s1 + $0x80] sm:$0xff]   ;;  %v367_v0 = vld [vmem:[%s4695_s0 + $0x10] sm:$0xff] }
  0x33   : > { %3227 = vmatpush3.bf16.msra.mxu1 %v3566_v35  ;;  %v366_v55 = vld [vmem:[%s4695_s0 + $0x8] sm:$0xff]  ;;  %v365_v58 = vld [vmem:[%s4695_s0] sm:$0xff]  ;;  %2094 = vmatprep.mubr.bf16.mxu1 %v393_v62  ;;  %v392_v1 = vpack.c.bf16 %v367_v0, %v367_v0  ;;  %v3589_v2 = vld [vmem:[%s4696_s1 + $0x1f8] sm:$0xff]  }
  0x34   : > { %3228 = vmatprep.subr.bf16.mxu1 %v3569_v38  ;;  %v391_v56 = vpack.c.bf16 %v366_v55, %v366_v55  ;;  %v390_v59 = vpack.c.bf16 %v365_v58, %v365_v58  ;;  %v3590_v3 = vld [vmem:[%s4696_s1 + $0x1b8] sm:$0xff]   ;;  %v3591_v4 = vld [vmem:[%s4696_s1 + $0x170] sm:$0xff]   ;;  %v3595_v8 = vld [vmem:[%s4696_s1 + $0x168] sm:$0xff]  }
  0x35   : > { %3207 = vmatpush3.bf16.msra.mxu0 %v3568_v37  ;;  %v3592_v5 = vld [vmem:[%s4696_s1 + $0x130] sm:$0xff]   ;;  %v3596_v9 = vld [vmem:[%s4696_s1 + $0x128] sm:$0xff]   ;;  %v3599_v12 = vld [vmem:[%s4696_s1 + $0x160] sm:$0xff]  }
  0x36   : > { %3208 = vmatprep.subr.bf16.mxu0 %v3571_v40  ;;  %2054 = vmatprep.mubr.bf16.mxu0 %v391_v56  ;;  %v3593_v6 = vld [vmem:[%s4696_s1 + $0x1f0] sm:$0xff]   ;;  %v3597_v10 = vld [vmem:[%s4696_s1 + $0x1e8] sm:$0xff]   ;;  %v3600_v13 = vld [vmem:[%s4696_s1 + $0x120] sm:$0xff]  }
  0x37   : > { %3229 = vmatpush3.bf16.msra.mxu1 %v3570_v39  ;;  %v3594_v7 = vld [vmem:[%s4696_s1 + $0x1b0] sm:$0xff]   ;;  %v3598_v11 = vld [vmem:[%s4696_s1 + $0x1a8] sm:$0xff]   ;;  %v3601_v14 = vld [vmem:[%s4696_s1 + $0x1e0] sm:$0xff]  }
  0x38   : > { %3230 = vmatprep.subr.bf16.mxu1 %v3573_v42  ;;  %v3602_v15 = vld [vmem:[%s4696_s1 + $0x1a0] sm:$0xff]   ;;  %v3603_v16 = vld [vmem:[%s4696_s1 + $0x158] sm:$0xff]   ;;  %v3607_v20 = vld [vmem:[%s4696_s1 + $0x150] sm:$0xff]  }
  0x39   : > { %3209 = vmatpush3.bf16.msra.mxu0 %v3572_v41  ;;  %v3604_v17 = vld [vmem:[%s4696_s1 + $0x118] sm:$0xff]   ;;  %v3608_v21 = vld [vmem:[%s4696_s1 + $0x110] sm:$0xff]   ;;  %v3611_v24 = vld [vmem:[%s4696_s1 + $0x148] sm:$0xff]  }
  0x3a   : > { %3210 = vmatprep.subr.bf16.mxu0 %v3575_v44  ;;  %v3605_v18 = vld [vmem:[%s4696_s1 + $0x1d8] sm:$0xff]   ;;  %v3609_v22 = vld [vmem:[%s4696_s1 + $0x1d0] sm:$0xff]   ;;  %v3612_v25 = vld [vmem:[%s4696_s1 + $0x108] sm:$0xff]  }
  0x3b   : > { %3231 = vmatpush3.bf16.msra.mxu1 %v3574_v43  ;;  %v3606_v19 = vld [vmem:[%s4696_s1 + $0x198] sm:$0xff]   ;;  %v3610_v23 = vld [vmem:[%s4696_s1 + $0x190] sm:$0xff]   ;;  %v3613_v26 = vld [vmem:[%s4696_s1 + $0x1c8] sm:$0xff]  }
  0x3c   : > { %3232 = vmatprep.subr.bf16.mxu1 %v3577_v46  ;;  %v3614_v27 = vld [vmem:[%s4696_s1 + $0x188] sm:$0xff]   ;;  %v3615_v28 = vld [vmem:[%s4696_s1 + $0x140] sm:$0xff]   ;;  %v3619_v36 = vld [vmem:[%s4696_s1 + $0x278] sm:$0xff]  }
  0x3d   : > { %3211 = vmatpush3.bf16.msra.mxu0 %v3576_v45  ;;  %v3616_v29 = vld [vmem:[%s4696_s1 + $0x100] sm:$0xff]   ;;  %v370_v31 = vld [vmem:[%s4695_s0 + $0x28] sm:$0xff]  ;;  %v372_v37 = vld [vmem:[%s4695_s0 + $0x38] sm:$0xff] }
  0x3e   : > { %3212 = vmatprep.subr.bf16.mxu0 %v3579_v48  ;;  %v3617_v30 = vld [vmem:[%s4696_s1 + $0x1c0] sm:$0xff]   ;;  %v395_v32 = vpack.c.bf16 %v370_v31, %v370_v31  ;;  %v397_v38 = vpack.c.bf16 %v372_v37, %v372_v37  ;;  %v3620_v39 = vld [vmem:[%s4696_s1 + $0x238] sm:$0xff]   ;;  %v371_v40 = vld [vmem:[%s4695_s0 + $0x30] sm:$0xff] }
  0x3f   : > { %3233 = vmatpush3.bf16.msra.mxu1 %v3578_v47  ;;  %v3618_v33 = vld [vmem:[%s4696_s1 + $0x180] sm:$0xff]   ;;  %v396_v41 = vpack.c.bf16 %v371_v40, %v371_v40  ;;  %v3621_v42 = vld [vmem:[%s4696_s1 + $0x2f8] sm:$0xff]   ;;  %v3623_v44 = vld [vmem:[%s4696_s1 + $0x270] sm:$0xff]  }
  0x40   : > { %3234 = vmatprep.subr.bf16.mxu1 %v3581_v50  ;;  %v369_v34 = vld [vmem:[%s4695_s0 + $0x20] sm:$0xff]  ;;  %v3622_v43 = vld [vmem:[%s4696_s1 + $0x2b8] sm:$0xff]   ;;  %v3624_v45 = vld [vmem:[%s4696_s1 + $0x230] sm:$0xff]  }
  0x41   : > { %3213 = vmatpush3.bf16.msra.mxu0 %v3580_v49  ;;  %v394_v35 = vpack.c.bf16 %v369_v34, %v369_v34  ;;  %v3625_v46 = vld [vmem:[%s4696_s1 + $0x2f0] sm:$0xff]   ;;  %v3627_v48 = vld [vmem:[%s4696_s1 + $0x268] sm:$0xff]   ;;  %v3634_v55 = vld [vmem:[%s4696_s1 + $0x2a0] sm:$0xff]  }
  0x42   : > { %3214 = vmatprep.subr.bf16.mxu0 %v3583_v52  ;;  %v3626_v47 = vld [vmem:[%s4696_s1 + $0x2b0] sm:$0xff]   ;;  %v3628_v49 = vld [vmem:[%s4696_s1 + $0x228] sm:$0xff]   ;;  %v3631_v52 = vld [vmem:[%s4696_s1 + $0x260] sm:$0xff]  }
  0x43   : > { %3235 = vmatpush3.bf16.msra.mxu1 %v3582_v51  ;;  %v3629_v50 = vld [vmem:[%s4696_s1 + $0x2e8] sm:$0xff]   ;;  %v3635_v56 = vld [vmem:[%s4696_s1 + $0x258] sm:$0xff]   ;;  %v3640_v61 = vld [vmem:[%s4696_s1 + $0x210] sm:$0xff]  }
  0x44   : > { %3236 = vmatprep.subr.bf16.mxu1 %v3585_v54  ;;  %v3630_v51 = vld [vmem:[%s4696_s1 + $0x2a8] sm:$0xff]   ;;  %v3633_v54 = vld [vmem:[%s4696_s1 + $0x2e0] sm:$0xff]   ;;  %v3637_v58 = vld [vmem:[%s4696_s1 + $0x2d8] sm:$0xff]  }
  0x45   : > { %3215 = vmatpush3.bf16.msra.mxu0 %v3584_v53  ;;  %v3632_v53 = vld [vmem:[%s4696_s1 + $0x220] sm:$0xff]   ;;  %v3641_v62 = vld [vmem:[%s4696_s1 + $0x2d0] sm:$0xff]   ;;  %v3643_v0 = vld [vmem:[%s4696_s1 + $0x248] sm:$0xff]  }
  0x46   : > { %3244 = vmatprep.subr.bf16.mxu0 %v3587_v60  ;;  %v3639_v60 = vld [vmem:[%s4696_s1 + $0x250] sm:$0xff]   ;;  %v3666_v31 = vld [vmem:[%s4696_s1 + $0x3a0] sm:$0xff]   ;;  %v3669_v34 = vld [vmem:[%s4696_s1 + $0x3d8] sm:$0xff]  }
  0x47   : > { %3237 = vmatpush3.bf16.msra.mxu1 %v3586_v57  ;;  %v3636_v57 = vld [vmem:[%s4696_s1 + $0x218] sm:$0xff]   ;;  %v3672_v37 = vld [vmem:[%s4696_s1 + $0x310] sm:$0xff]   ;;  %v3675_v40 = vld [vmem:[%s4696_s1 + $0x348] sm:$0xff]  }
  0x48   : > { %2055 = vmatmul.mubr.bf16.vlgmr.msra.gmra.mxu0 %v390_v59  ;;  %3266 = vmatprep.subr.bf16.mxu1 %v3589_v2  ;;  %v3638_v59 = vld [vmem:[%s4696_s1 + $0x298] sm:$0xff]   ;;  %v3645_v2 = vld [vmem:[%s4696_s1 + $0x2c8] sm:$0xff]  }
  0x49   : > { %3245 = vmatpush3.bf16.msra.mxu0 %v3588_v63  ;;  %2134 = vmatprep.mubr.bf16.mxu0 %v395_v32  ;;  %v3642_v63 = vld [vmem:[%s4696_s1 + $0x290] sm:$0xff]   ;;  %v3667_v32 = vld [vmem:[%s4696_s1 + $0x358] sm:$0xff]  }
  0x4a   : > { %2095 = vmatmul.mubr.bf16.vlgmr.msra.gmra.mxu1 %v392_v1  ;;  %3246 = vmatprep.subr.bf16.mxu0 %v3591_v4  ;;  %v3644_v1 = vld [vmem:[%s4696_s1 + $0x208] sm:$0xff]   ;;  %v3647_v4 = vld [vmem:[%s4696_s1 + $0x240] sm:$0xff]  }
  0x4b   : > { %3267 = vmatpush3.bf16.msra.mxu1 %v3590_v3  ;;  %2174 = vmatprep.mubr.bf16.mxu1 %v397_v38  ;;  %v3646_v3 = vld [vmem:[%s4696_s1 + $0x288] sm:$0xff]   ;;  %v3673_v38 = vld [vmem:[%s4696_s1 + $0x3d0] sm:$0xff]  }
  0x4c   : > { %3268 = vmatprep.subr.bf16.mxu1 %v3593_v6  ;;  %v3649_v6 = vld [vmem:[%s4696_s1 + $0x2c0] sm:$0xff]  }
  0x4d   : > { %3247 = vmatpush3.bf16.msra.mxu0 %v3592_v5  ;;  %v3648_v5 = vld [vmem:[%s4696_s1 + $0x200] sm:$0xff]  }
  0x4e   : > { %3248 = vmatprep.subr.bf16.mxu0 %v3595_v8 }
  0x4f   : > { %3269 = vmatpush3.bf16.msra.mxu1 %v3594_v7  ;;  %v374_v7 = vld [vmem:[%s4695_s0 + $0x48] sm:$0xff] }
  0x50   : > { %3270 = vmatprep.subr.bf16.mxu1 %v3597_v10  ;;  %v399_v8 = vpack.c.bf16 %v374_v7, %v374_v7  ;;  %v373_v10 = vld [vmem:[%s4695_s0 + $0x40] sm:$0xff] }
  0x51   : > { %3249 = vmatpush3.bf16.msra.mxu0 %v3596_v9  ;;  %v3650_v9 = vld [vmem:[%s4696_s1 + $0x280] sm:$0xff]  }
  0x52   : > { %3250 = vmatprep.subr.bf16.mxu0 %v3599_v12  ;;  %v3651_v12 = vld [vmem:[%s4696_s1 + $0x378] sm:$0xff]   ;;  %v3698_v7 = vld [vmem:[%s4696_s1 + $0x4a0] sm:$0xff]  }
  0x53   : > { %3271 = vmatpush3.bf16.msra.mxu1 %v3598_v11  ;;  %v398_v11 = vpack.c.bf16 %v373_v10, %v373_v10  ;;  %v3701_v10 = vld [vmem:[%s4696_s1 + $0x4d8] sm:$0xff]  }
  0x54   : > { %3272 = vmatprep.subr.bf16.mxu1 %v3601_v14 }
  0x55   : > { %3251 = vmatpush3.bf16.msra.mxu0 %v3600_v13  ;;  %v376_v13 = vld [vmem:[%s4695_s0 + $0x58] sm:$0xff] }
  0x56   : > { %3252 = vmatprep.subr.bf16.mxu0 %v3603_v16  ;;  %v401_v14 = vpack.c.bf16 %v376_v13, %v376_v13  ;;  %v375_v16 = vld [vmem:[%s4695_s0 + $0x50] sm:$0xff] }
  0x57   : > { %3273 = vmatpush3.bf16.msra.mxu1 %v3602_v15  ;;  %v3652_v15 = vld [vmem:[%s4696_s1 + $0x338] sm:$0xff]   ;;  %v3704_v13 = vld [vmem:[%s4696_s1 + $0x410] sm:$0xff]  }
  0x58   : > { %3274 = vmatprep.subr.bf16.mxu1 %v3605_v18  ;;  %v3653_v18 = vld [vmem:[%s4696_s1 + $0x3f8] sm:$0xff]  }
  0x59   : > { %3253 = vmatpush3.bf16.msra.mxu0 %v3604_v17  ;;  %v400_v17 = vpack.c.bf16 %v375_v16, %v375_v16  ;;  %v3707_v16 = vld [vmem:[%s4696_s1 + $0x448] sm:$0xff]  }
  0x5a   : > { %3254 = vmatprep.subr.bf16.mxu0 %v3607_v20  ;;  %v3655_v20 = vld [vmem:[%s4696_s1 + $0x370] sm:$0xff]  }
  0x5b   : > { %3275 = vmatpush3.bf16.msra.mxu1 %v3606_v19  ;;  %v3654_v19 = vld [vmem:[%s4696_s1 + $0x3b8] sm:$0xff]  }
  0x5c   : > { %3276 = vmatprep.subr.bf16.mxu1 %v3609_v22  ;;  %v3657_v22 = vld [vmem:[%s4696_s1 + $0x3f0] sm:$0xff]  }
  0x5d   : > { %3255 = vmatpush3.bf16.msra.mxu0 %v3608_v21  ;;  %v3656_v21 = vld [vmem:[%s4696_s1 + $0x330] sm:$0xff]  }
  0x5e   : > { %3256 = vmatprep.subr.bf16.mxu0 %v3611_v24  ;;  %v3659_v24 = vld [vmem:[%s4696_s1 + $0x368] sm:$0xff]  }
  0x5f   : > { %3277 = vmatpush3.bf16.msra.mxu1 %v3610_v23  ;;  %v3658_v23 = vld [vmem:[%s4696_s1 + $0x3b0] sm:$0xff]  }
  0x60   : > { %3278 = vmatprep.subr.bf16.mxu1 %v3613_v26  ;;  %v3661_v26 = vld [vmem:[%s4696_s1 + $0x3e8] sm:$0xff]  }
  0x61   : > { %3257 = vmatpush3.bf16.msra.mxu0 %v3612_v25  ;;  %v3660_v25 = vld [vmem:[%s4696_s1 + $0x328] sm:$0xff]  }
  0x62   : > { %3258 = vmatprep.subr.bf16.mxu0 %v3615_v28  ;;  %v3663_v28 = vld [vmem:[%s4696_s1 + $0x360] sm:$0xff]  }
  0x63   : > { %3279 = vmatpush3.bf16.msra.mxu1 %v3614_v27  ;;  %v3662_v27 = vld [vmem:[%s4696_s1 + $0x3a8] sm:$0xff]  }
  0x64   : > { %3280 = vmatprep.subr.bf16.mxu1 %v3617_v30  ;;  %v3665_v30 = vld [vmem:[%s4696_s1 + $0x3e0] sm:$0xff]  }
  0x65   : > { %3259 = vmatpush3.bf16.msra.mxu0 %v3616_v29  ;;  %v3664_v29 = vld [vmem:[%s4696_s1 + $0x320] sm:$0xff]  }
  0x66   : > { %3288 = vmatprep.subr.bf16.mxu0 %v3619_v36  ;;  %v3671_v36 = vld [vmem:[%s4696_s1 + $0x350] sm:$0xff]  }
  0x67   : > { %3281 = vmatpush3.bf16.msra.mxu1 %v3618_v33  ;;  %v3668_v33 = vld [vmem:[%s4696_s1 + $0x318] sm:$0xff]  }
  0x68   : > { %2135 = vmatmul.mubr.bf16.vlgmr.msra.gmra.mxu0 %v394_v35  ;;  %3310 = vmatprep.subr.bf16.mxu1 %v3621_v42  ;;  %v3670_v35 = vld [vmem:[%s4696_s1 + $0x398] sm:$0xff]   ;;  %v3677_v42 = vld [vmem:[%s4696_s1 + $0x3c8] sm:$0xff]  }
  0x69   : > { %3289 = vmatpush3.bf16.msra.mxu0 %v3620_v39  ;;  %2214 = vmatprep.mubr.bf16.mxu0 %v399_v8  ;;  %v3674_v39 = vld [vmem:[%s4696_s1 + $0x390] sm:$0xff]   ;;  %v3699_v8 = vld [vmem:[%s4696_s1 + $0x458] sm:$0xff]  }
  0x6a   : > { %2175 = vmatmul.mubr.bf16.vlgmr.msra.gmra.mxu1 %v396_v41  ;;  %3290 = vmatprep.subr.bf16.mxu0 %v3623_v44  ;;  %v3676_v41 = vld [vmem:[%s4696_s1 + $0x308] sm:$0xff]   ;;  %v3679_v44 = vld [vmem:[%s4696_s1 + $0x340] sm:$0xff]  }
  0x6b   : > { %3311 = vmatpush3.bf16.msra.mxu1 %v3622_v43  ;;  %2254 = vmatprep.mubr.bf16.mxu1 %v401_v14  ;;  %v3678_v43 = vld [vmem:[%s4696_s1 + $0x388] sm:$0xff]   ;;  %v3705_v14 = vld [vmem:[%s4696_s1 + $0x4d0] sm:$0xff]  }
  0x6c   : > { %3312 = vmatprep.subr.bf16.mxu1 %v3625_v46  ;;  %v3681_v46 = vld [vmem:[%s4696_s1 + $0x3c0] sm:$0xff]  }
  0x6d   : > { %3291 = vmatpush3.bf16.msra.mxu0 %v3624_v45  ;;  %v3680_v45 = vld [vmem:[%s4696_s1 + $0x300] sm:$0xff]  }
  0x6e   : > { %3292 = vmatprep.subr.bf16.mxu0 %v3627_v48 }
  0x6f   : > { %3313 = vmatpush3.bf16.msra.mxu1 %v3626_v47  ;;  %v378_v47 = vld [vmem:[%s4695_s0 + $0x68] sm:$0xff] }
  0x70   : > { %3314 = vmatprep.subr.bf16.mxu1 %v3629_v50  ;;  %v403_v48 = vpack.c.bf16 %v378_v47, %v378_v47  ;;  %v377_v50 = vld [vmem:[%s4695_s0 + $0x60] sm:$0xff] }
  0x71   : > { %3293 = vmatpush3.bf16.msra.mxu0 %v3628_v49  ;;  %v3682_v49 = vld [vmem:[%s4696_s1 + $0x380] sm:$0xff]  }
  0x72   : > { %3294 = vmatprep.subr.bf16.mxu0 %v3631_v52  ;;  %v3683_v52 = vld [vmem:[%s4696_s1 + $0x478] sm:$0xff]   ;;  %v3730_v47 = vld [vmem:[%s4696_s1 + $0x5a0] sm:$0xff]  }
  0x73   : > { %3315 = vmatpush3.bf16.msra.mxu1 %v3630_v51  ;;  %v402_v51 = vpack.c.bf16 %v377_v50, %v377_v50  ;;  %v3733_v50 = vld [vmem:[%s4696_s1 + $0x5d8] sm:$0xff]  }
  0x74   : > { %3316 = vmatprep.subr.bf16.mxu1 %v3633_v54 }
  0x75   : > { %3295 = vmatpush3.bf16.msra.mxu0 %v3632_v53  ;;  %v380_v53 = vld [vmem:[%s4695_s0 + $0x78] sm:$0xff] }
  0x76   : > { %3296 = vmatprep.subr.bf16.mxu0 %v3635_v56  ;;  %v405_v54 = vpack.c.bf16 %v380_v53, %v380_v53  ;;  %v379_v56 = vld [vmem:[%s4695_s0 + $0x70] sm:$0xff] }
  0x77   : > { %3317 = vmatpush3.bf16.msra.mxu1 %v3634_v55  ;;  %v3684_v55 = vld [vmem:[%s4696_s1 + $0x438] sm:$0xff]   ;;  %v3736_v53 = vld [vmem:[%s4696_s1 + $0x510] sm:$0xff]  }
  0x78   : > { %3318 = vmatprep.subr.bf16.mxu1 %v3637_v58  ;;  %v3685_v58 = vld [vmem:[%s4696_s1 + $0x4f8] sm:$0xff]  }
  0x79   : > { %3297 = vmatpush3.bf16.msra.mxu0 %v3636_v57  ;;  %v404_v57 = vpack.c.bf16 %v379_v56, %v379_v56  ;;  %v3739_v56 = vld [vmem:[%s4696_s1 + $0x548] sm:$0xff]  }
  0x7a   : > { %3298 = vmatprep.subr.bf16.mxu0 %v3639_v60  ;;  %v3687_v60 = vld [vmem:[%s4696_s1 + $0x470] sm:$0xff]  }
  0x7b   : > { %3319 = vmatpush3.bf16.msra.mxu1 %v3638_v59  ;;  %v3686_v59 = vld [vmem:[%s4696_s1 + $0x4b8] sm:$0xff]  }
  0x7c   : > { %3320 = vmatprep.subr.bf16.mxu1 %v3641_v62  ;;  %v3689_v62 = vld [vmem:[%s4696_s1 + $0x4f0] sm:$0xff]  }
  0x7d   : > { %3299 = vmatpush3.bf16.msra.mxu0 %v3640_v61  ;;  %v3688_v61 = vld [vmem:[%s4696_s1 + $0x430] sm:$0xff]  }
  0x7e   : > { %3300 = vmatprep.subr.bf16.mxu0 %v3643_v0  ;;  %v3691_v0 = vld [vmem:[%s4696_s1 + $0x468] sm:$0xff]  }
  0x7f   : > { %3321 = vmatpush3.bf16.msra.mxu1 %v3642_v63  ;;  %v3690_v63 = vld [vmem:[%s4696_s1 + $0x4b0] sm:$0xff]  }
  0x80   : > { %3322 = vmatprep.subr.bf16.mxu1 %v3645_v2  ;;  %v3693_v2 = vld [vmem:[%s4696_s1 + $0x4e8] sm:$0xff]  }
  0x81   : > { %3301 = vmatpush3.bf16.msra.mxu0 %v3644_v1  ;;  %v3692_v1 = vld [vmem:[%s4696_s1 + $0x428] sm:$0xff]  }
  0x82   : > { %3302 = vmatprep.subr.bf16.mxu0 %v3647_v4  ;;  %v3695_v4 = vld [vmem:[%s4696_s1 + $0x460] sm:$0xff]  }
  0x83   : > { %3323 = vmatpush3.bf16.msra.mxu1 %v3646_v3  ;;  %v3694_v3 = vld [vmem:[%s4696_s1 + $0x4a8] sm:$0xff]  }
  0x84   : > { %3324 = vmatprep.subr.bf16.mxu1 %v3649_v6  ;;  %v3697_v6 = vld [vmem:[%s4696_s1 + $0x4e0] sm:$0xff]  }
  0x85   : > { %3303 = vmatpush3.bf16.msra.mxu0 %v3648_v5  ;;  %v3696_v5 = vld [vmem:[%s4696_s1 + $0x420] sm:$0xff]  }
  0x86   : > { %3332 = vmatprep.subr.bf16.mxu0 %v3651_v12  ;;  %v3703_v12 = vld [vmem:[%s4696_s1 + $0x450] sm:$0xff]  }
  0x87   : > { %3325 = vmatpush3.bf16.msra.mxu1 %v3650_v9  ;;  %v3700_v9 = vld [vmem:[%s4696_s1 + $0x418] sm:$0xff]  }
  0x88   : > { %2215 = vmatmul.mubr.bf16.vlgmr.msra.gmra.mxu0 %v398_v11  ;;  %3354 = vmatprep.subr.bf16.mxu1 %v3653_v18  ;;  %v3702_v11 = vld [vmem:[%s4696_s1 + $0x498] sm:$0xff]   ;;  %v3709_v18 = vld [vmem:[%s4696_s1 + $0x4c8] sm:$0xff]  }
  0x89   : > { %3333 = vmatpush3.bf16.msra.mxu0 %v3652_v15  ;;  %2294 = vmatprep.mubr.bf16.mxu0 %v403_v48  ;;  %v3706_v15 = vld [vmem:[%s4696_s1 + $0x490] sm:$0xff]   ;;  %v3731_v48 = vld [vmem:[%s4696_s1 + $0x558] sm:$0xff]  }
  0x8a   : > { %2255 = vmatmul.mubr.bf16.vlgmr.msra.gmra.mxu1 %v400_v17  ;;  %3334 = vmatprep.subr.bf16.mxu0 %v3655_v20  ;;  %v3708_v17 = vld [vmem:[%s4696_s1 + $0x408] sm:$0xff]   ;;  %v3711_v20 = vld [vmem:[%s4696_s1 + $0x440] sm:$0xff]  }
  0x8b   : > { %3355 = vmatpush3.bf16.msra.mxu1 %v3654_v19  ;;  %2334 = vmatprep.mubr.bf16.mxu1 %v405_v54  ;;  %v3710_v19 = vld [vmem:[%s4696_s1 + $0x488] sm:$0xff]   ;;  %v3737_v54 = vld [vmem:[%s4696_s1 + $0x5d0] sm:$0xff]  }
  0x8c   : > { %3356 = vmatprep.subr.bf16.mxu1 %v3657_v22  ;;  %v3713_v22 = vld [vmem:[%s4696_s1 + $0x4c0] sm:$0xff]  }
  0x8d   : > { %3335 = vmatpush3.bf16.msra.mxu0 %v3656_v21  ;;  %v3712_v21 = vld [vmem:[%s4696_s1 + $0x400] sm:$0xff]  }
  0x8e   : > { %3336 = vmatprep.subr.bf16.mxu0 %v3659_v24 }
  0x8f   : > { %3357 = vmatpush3.bf16.msra.mxu1 %v3658_v23  ;;  %v382_v23 = vld [vmem:[%s4695_s0 + $0x88] sm:$0xff] }
  0x90   : > { %3358 = vmatprep.subr.bf16.mxu1 %v3661_v26  ;;  %v407_v24 = vpack.c.bf16 %v382_v23, %v382_v23  ;;  %v381_v26 = vld [vmem:[%s4695_s0 + $0x80] sm:$0xff] }
  0x91   : > { %3337 = vmatpush3.bf16.msra.mxu0 %v3660_v25  ;;  %v3714_v25 = vld [vmem:[%s4696_s1 + $0x480] sm:$0xff]  }
  0x92   : > { %3338 = vmatprep.subr.bf16.mxu0 %v3663_v28  ;;  %v3715_v28 = vld [vmem:[%s4696_s1 + $0x578] sm:$0xff]  }
  0x93   : > { %3359 = vmatpush3.bf16.msra.mxu1 %v3662_v27  ;;  %v406_v27 = vpack.c.bf16 %v381_v26, %v381_v26 }
  0x94   : > { %3360 = vmatprep.subr.bf16.mxu1 %v3665_v30 }
  0x95   : > { %3339 = vmatpush3.bf16.msra.mxu0 %v3664_v29  ;;  %v384_v29 = vld [vmem:[%s4695_s0 + $0x98] sm:$0xff] }
  0x96   : > { %3340 = vmatprep.subr.bf16.mxu0 %v3667_v32  ;;  %v409_v30 = vpack.c.bf16 %v384_v29, %v384_v29  ;;  %v383_v32 = vld [vmem:[%s4695_s0 + $0x90] sm:$0xff] }
  0x97   : > { %3361 = vmatpush3.bf16.msra.mxu1 %v3666_v31  ;;  %v3716_v31 = vld [vmem:[%s4696_s1 + $0x538] sm:$0xff]  }
  0x98   : > { %3362 = vmatprep.subr.bf16.mxu1 %v3669_v34  ;;  %v3717_v34 = vld [vmem:[%s4696_s1 + $0x5f8] sm:$0xff]  }
  0x99   : > { %3341 = vmatpush3.bf16.msra.mxu0 %v3668_v33  ;;  %v408_v33 = vpack.c.bf16 %v383_v32, %v383_v32 }
  0x9a   : > { %3342 = vmatprep.subr.bf16.mxu0 %v3671_v36  ;;  %v3719_v36 = vld [vmem:[%s4696_s1 + $0x570] sm:$0xff]  }
  0x9b   : > { %3363 = vmatpush3.bf16.msra.mxu1 %v3670_v35  ;;  %v3718_v35 = vld [vmem:[%s4696_s1 + $0x5b8] sm:$0xff]  }
  0x9c   : > { %3364 = vmatprep.subr.bf16.mxu1 %v3673_v38  ;;  %v3721_v38 = vld [vmem:[%s4696_s1 + $0x5f0] sm:$0xff]  }
  0x9d   : > { %3343 = vmatpush3.bf16.msra.mxu0 %v3672_v37  ;;  %v3720_v37 = vld [vmem:[%s4696_s1 + $0x530] sm:$0xff]  }
  0x9e   : > { %3344 = vmatprep.subr.bf16.mxu0 %v3675_v40  ;;  %v3723_v40 = vld [vmem:[%s4696_s1 + $0x568] sm:$0xff]  }
  0x9f   : > { %3365 = vmatpush3.bf16.msra.mxu1 %v3674_v39  ;;  %v3722_v39 = vld [vmem:[%s4696_s1 + $0x5b0] sm:$0xff]  }
  0xa0   : > { %3366 = vmatprep.subr.bf16.mxu1 %v3677_v42  ;;  %v3725_v42 = vld [vmem:[%s4696_s1 + $0x5e8] sm:$0xff]  }
  0xa1   : > { %3345 = vmatpush3.bf16.msra.mxu0 %v3676_v41  ;;  %v3724_v41 = vld [vmem:[%s4696_s1 + $0x528] sm:$0xff]  }
  0xa2   : > { %3346 = vmatprep.subr.bf16.mxu0 %v3679_v44  ;;  %v3727_v44 = vld [vmem:[%s4696_s1 + $0x560] sm:$0xff]  }
  0xa3   : > { %3367 = vmatpush3.bf16.msra.mxu1 %v3678_v43  ;;  %v3726_v43 = vld [vmem:[%s4696_s1 + $0x5a8] sm:$0xff]  }
  0xa4   : > { %3368 = vmatprep.subr.bf16.mxu1 %v3681_v46  ;;  %v3729_v46 = vld [vmem:[%s4696_s1 + $0x5e0] sm:$0xff]  }
  0xa5   : > { %3347 = vmatpush3.bf16.msra.mxu0 %v3680_v45  ;;  %v3728_v45 = vld [vmem:[%s4696_s1 + $0x520] sm:$0xff]  }
  0xa6   : > { %3376 = vmatprep.subr.bf16.mxu0 %v3683_v52  ;;  %v3735_v52 = vld [vmem:[%s4696_s1 + $0x550] sm:$0xff]  }
  0xa7   : > { %3369 = vmatpush3.bf16.msra.mxu1 %v3682_v49  ;;  %v3732_v49 = vld [vmem:[%s4696_s1 + $0x518] sm:$0xff]  }
  0xa8   : > { %2295 = vmatmul.mubr.bf16.vlgmr.msra.gmra.mxu0 %v402_v51  ;;  %3398 = vmatprep.subr.bf16.mxu1 %v3685_v58  ;;  %v3734_v51 = vld [vmem:[%s4696_s1 + $0x598] sm:$0xff]   ;;  %v3741_v58 = vld [vmem:[%s4696_s1 + $0x5c8] sm:$0xff]  }
  0xa9   : > { %3377 = vmatpush3.bf16.msra.mxu0 %v3684_v55  ;;  %2374 = vmatprep.mubr.bf16.mxu0 %v407_v24  ;;  %v3738_v55 = vld [vmem:[%s4696_s1 + $0x590] sm:$0xff]  }
  0xaa   : > { %2335 = vmatmul.mubr.bf16.vlgmr.msra.gmra.mxu1 %v404_v57  ;;  %3378 = vmatprep.subr.bf16.mxu0 %v3687_v60  ;;  %v3740_v57 = vld [vmem:[%s4696_s1 + $0x508] sm:$0xff]   ;;  %v3743_v60 = vld [vmem:[%s4696_s1 + $0x540] sm:$0xff]  }
  0xab   : > { %3399 = vmatpush3.bf16.msra.mxu1 %v3686_v59  ;;  %2414 = vmatprep.mubr.bf16.mxu1 %v409_v30  ;;  %v3742_v59 = vld [vmem:[%s4696_s1 + $0x588] sm:$0xff]  }
  0xac   : > { %3400 = vmatprep.subr.bf16.mxu1 %v3689_v62  ;;  %v3745_v62 = vld [vmem:[%s4696_s1 + $0x5c0] sm:$0xff]  }
  0xad   : > { %3379 = vmatpush3.bf16.msra.mxu0 %v3688_v61  ;;  %v3744_v61 = vld [vmem:[%s4696_s1 + $0x500] sm:$0xff]  }
  0xae   : > { %3380 = vmatprep.subr.bf16.mxu0 %v3691_v0 }
  0xaf   : > { %3401 = vmatpush3.bf16.msra.mxu1 %v3690_v63  ;;  %v386_v63 = vld [vmem:[%s4695_s0 + $0xa8] sm:$0xff] }
  0xb0   : > { %3402 = vmatprep.subr.bf16.mxu1 %v3693_v2  ;;  %v411_v0 = vpack.c.bf16 %v386_v63, %v386_v63  ;;  %v385_v2 = vld [vmem:[%s4695_s0 + $0xa0] sm:$0xff] }
  0xb1   : > { %3381 = vmatpush3.bf16.msra.mxu0 %v3692_v1  ;;  %v3746_v1 = vld [vmem:[%s4696_s1 + $0x580] sm:$0xff]  }
  0xb2   : > { %3382 = vmatprep.subr.bf16.mxu0 %v3695_v4  ;;  %v388_v4 = vld [vmem:[%s4695_s0 + $0xb8] sm:$0xff] }
  0xb3   : > { %3403 = vmatpush3.bf16.msra.mxu1 %v3694_v3  ;;  %v3823_v3 = vmov 0.0  }
  0xb4   : > { %3404 = vmatprep.subr.bf16.mxu1 %v3697_v6  ;;  %v413_v6 = vpack.c.bf16 %v388_v4, %v388_v4 }
  0xb5   : > { %3383 = vmatpush3.bf16.msra.mxu0 %v3696_v5  ;;  %v410_v5 = vpack.c.bf16 %v385_v2, %v385_v2  ;;  %v3773_v2 = vld [vmem:[%s4645_s13 + $0x84] ss:$20 sps:$4 sm:$0xff]  }
  0xb6   : > { %3384 = vmatprep.subr.bf16.mxu0 %v3699_v8  ;;  %v387_v8 = vld [vmem:[%s4695_s0 + $0xb0] sm:$0xff] }
  0xb7   : > { %3405 = vmatpush3.bf16.msra.mxu1 %v3698_v7  ;;  %v3747_v7 = vld [vmem:[%s4696_s1 + $0x638] sm:$0xff]  }
  0xb8   : > { %3406 = vmatprep.subr.bf16.mxu1 %v3701_v10  ;;  %v3748_v10 = vld [vmem:[%s4696_s1 + $0x630] sm:$0xff]  }
  0xb9   : > { %3385 = vmatpush3.bf16.msra.mxu0 %v3700_v9  ;;  %v412_v9 = vpack.c.bf16 %v387_v8, %v387_v8 }
  0xba   : > { %3386 = vmatprep.subr.bf16.mxu0 %v3703_v12  ;;  %v3750_v12 = vld [vmem:[%s4696_s1 + $0x620] sm:$0xff]  }
  0xbb   : > { %3407 = vmatpush3.bf16.msra.mxu1 %v3702_v11  ;;  %v3749_v11 = vld [vmem:[%s4696_s1 + $0x628] sm:$0xff]  }
  0xbc   : > { %3408 = vmatprep.subr.bf16.mxu1 %v3705_v14  ;;  %v3752_v14 = vld [vmem:[%s4696_s1 + $0x610] sm:$0xff]  }
  0xbd   : > { %3387 = vmatpush3.bf16.msra.mxu0 %v3704_v13  ;;  %v3751_v13 = vld [vmem:[%s4696_s1 + $0x618] sm:$0xff]  }
  0xbe   : > { %3388 = vmatprep.subr.bf16.mxu0 %v3707_v16  ;;  %v3754_v16 = vld [vmem:[%s4696_s1 + $0x600] sm:$0xff]  }
  0xbf   : > { %3409 = vmatpush3.bf16.msra.mxu1 %v3706_v15  ;;  %v3753_v15 = vld [vmem:[%s4696_s1 + $0x608] sm:$0xff]  }
  0xc0   : > { %3410 = vmatprep.subr.bf16.mxu1 %v3709_v18  ;;  %v389_v18 = vld [vmem:[%s4695_s0 + $0xc0] sm:$0xff] }
  0xc1   : > { %3389 = vmatpush3.bf16.msra.mxu0 %v3708_v17 }
  0xc2   : > { %3390 = vmatprep.subr.bf16.mxu0 %v3711_v20 }
  0xc3   : > { %3411 = vmatpush3.bf16.msra.mxu1 %v3710_v19  ;;  %v2973_v19 = vld [vmem:[%s4697_s2] ss:$0 sm:$0xff] }
  0xc4   : > { %3412 = vmatprep.subr.bf16.mxu1 %v3713_v22 }
  0xc5   : > { %3391 = vmatpush3.bf16.msra.mxu0 %v3712_v21  ;;  %v414_v21 = vpack.c.bf16 %v389_v18, %v389_v18 }
  0xc6   : > { %3420 = vmatprep.subr.bf16.mxu0 %v3715_v28 }
  0xc7   : > { %3413 = vmatpush3.bf16.msra.mxu1 %v3714_v25 }
  0xc8   : > { %2375 = vmatmul.mubr.bf16.vlgmr.msra.gmra.mxu0 %v406_v27  ;;  %3442 = vmatprep.subr.bf16.mxu1 %v3717_v34 }
  0xc9   : > { %3421 = vmatpush3.bf16.msra.mxu0 %v3716_v31  ;;  %2454 = vmatprep.mubr.bf16.mxu0 %v411_v0 }
  0xca   : > { %2415 = vmatmul.mubr.bf16.vlgmr.msra.gmra.mxu1 %v408_v33  ;;  %3422 = vmatprep.subr.bf16.mxu0 %v3719_v36 }
  0xcb   : > { %3443 = vmatpush3.bf16.msra.mxu1 %v3718_v35  ;;  %2494 = vmatprep.mubr.bf16.mxu1 %v413_v6 }
  0xcc   : > { %3444 = vmatprep.subr.bf16.mxu1 %v3721_v38 }
  0xcd   : > { %3423 = vmatpush3.bf16.msra.mxu0 %v3720_v37 }
  0xce   : > { %3424 = vmatprep.subr.bf16.mxu0 %v3723_v40 }
  0xcf   : > { %3445 = vmatpush3.bf16.msra.mxu1 %v3722_v39 }
  0xd0   : > { %3446 = vmatprep.subr.bf16.mxu1 %v3725_v42 }
  0xd1   : > { %3425 = vmatpush3.bf16.msra.mxu0 %v3724_v41 }
  0xd2   : > { %3426 = vmatprep.subr.bf16.mxu0 %v3727_v44  ;;  %v3755_v44 = vld [vmem:[%s4645_s13 + $0x78] ss:$20 sps:$4 sm:$0xff]  }
  0xd3   : > { %3447 = vmatpush3.bf16.msra.mxu1 %v3726_v43 }
  0xd4   : > { %3448 = vmatprep.subr.bf16.mxu1 %v3729_v46  ;;  %v3758_v46 = vld [vmem:[%s4645_s13 + $0x88] ss:$20 sps:$4 sm:$0xff]  }
  0xd5   : > { %3427 = vmatpush3.bf16.msra.mxu0 %v3728_v45  ;;  %v3757_v45 = vld [vmem:[%s4645_s13 + $0x7c] ss:$20 sps:$4 sm:$0xff]  }
  0xd6   : > { %3428 = vmatprep.subr.bf16.mxu0 %v3731_v48  ;;  %v3761_v48 = vld [vmem:[%s4645_s13 + $0x54] ss:$20 sps:$4 sm:$0xff]  }
  0xd7   : > { %3449 = vmatpush3.bf16.msra.mxu1 %v3730_v47  ;;  %v3759_v47 = vld [vmem:[%s4645_s13 + $0x50] ss:$20 sps:$4 sm:$0xff]  }
  0xd8   : > { %3450 = vmatprep.subr.bf16.mxu1 %v3733_v50  ;;  %v3765_v50 = vld [vmem:[%s4645_s13 + $0x2c] ss:$20 sps:$4 sm:$0xff]  }
  0xd9   : > { %3429 = vmatpush3.bf16.msra.mxu0 %v3732_v49  ;;  %v3762_v49 = vld [vmem:[%s4645_s13 + $0x60] ss:$20 sps:$4 sm:$0xff]  }
  0xda   : > { %3430 = vmatprep.subr.bf16.mxu0 %v3735_v52  ;;  %v3766_v52 = vld [vmem:[%s4645_s13 + $0x38] ss:$20 sps:$4 sm:$0xff]  }
  0xdb   : > { %3451 = vmatpush3.bf16.msra.mxu1 %v3734_v51  ;;  %v3763_v51 = vld [vmem:[%s4645_s13 + $0x28] ss:$20 sps:$4 sm:$0xff]  }
  0xdc   : > { %3452 = vmatprep.subr.bf16.mxu1 %v3737_v54 }
  0xdd   : > { %3431 = vmatpush3.bf16.msra.mxu0 %v3736_v53 }
  0xde   : > { %3432 = vmatprep.subr.bf16.mxu0 %v3739_v56  ;;  %v3769_v56 = vld [vmem:[%s4645_s13 + $0x4] ss:$20 sps:$4 sm:$0xff]  }
  0xdf   : > { %3453 = vmatpush3.bf16.msra.mxu1 %v3738_v55 }
  0xe0   : > { %3454 = vmatprep.subr.bf16.mxu1 %v3741_v58  ;;  %v3767_v58 = vld [vmem:[%s4645_s13] ss:$20 sps:$4 sm:$0xff]  }
  0xe1   : > { %3433 = vmatpush3.bf16.msra.mxu0 %v3740_v57 }
  0xe2   : > { %3434 = vmatprep.subr.bf16.mxu0 %v3743_v60 }
  0xe3   : > { %3455 = vmatpush3.bf16.msra.mxu1 %v3742_v59 }
  0xe4   : > { %3456 = vmatprep.subr.bf16.mxu1 %v3745_v62 }
  0xe5   : > { %3435 = vmatpush3.bf16.msra.mxu0 %v3744_v61  ;;  %v3770_v61 = vld [vmem:[%s4645_s13 + $0x10] ss:$20 sps:$4 sm:$0xff]  }
  0xe6   : > { %3478 = vmatprep.subr.bf16.mxu0 %v3823_v3 }
  0xe7   : > { %3457 = vmatpush3.bf16.msra.mxu1 %v3746_v1 }
  0xe8   : > { %2455 = vmatmul.mubr.bf16.vlgmr.msra.gmra.mxu0 %v410_v5  ;;  %2710 = vmatprep.subr.bf16.mxu1 %v3757_v45  ;;  %v3825_v5 = vmov 0   ;;  %v3771_v45 = vld [vmem:[%s4645_s13 + $0x80] ss:$20 sps:$4 sm:$0xff]  }
  0xe9   : > { %3479 = vmatpush3.bf16.msra.mxu0 %v3747_v7  ;;  %3494 = vmatprep.mubr.msk.bf16.mxu0 %vm3824_vm0, %v3823_v3 }
  0xea   : > { %2495 = vmatmul.mubr.bf16.vlgmr.msra.gmra.mxu1 %v412_v9  ;;  %3480 = vmatprep.subr.bf16.mxu0 %v3823_v3 }
  0xeb   : > { %2711 = vmatpush1.bf16.msra.mxu1 %v3755_v44  ;;  %2734 = vmatprep.mubr.bf16.mxu1 %v3825_v5 }
  0xec   : > { %2712 = vmatprep.subr.bf16.mxu1 %v3761_v48 }
  0xed   : > { %3481 = vmatpush3.bf16.msra.mxu0 %v3748_v10 }
  0xee   : > { %3482 = vmatprep.subr.bf16.mxu0 %v3823_v3 }
  0xef   : > { %2713 = vmatpush1.bf16.msra.mxu1 %v3759_v47  ;;  %v3776_v47 = vld [vmem:[%s4645_s13 + $0x5c] ss:$20 sps:$4 sm:$0xff]  }
  0xf0   : > { %2714 = vmatprep.subr.bf16.mxu1 %v3765_v50  ;;  %v3774_v50 = vld [vmem:[%s4645_s13 + $0x58] ss:$20 sps:$4 sm:$0xff]  }
  0xf1   : > { %3483 = vmatpush3.bf16.msra.mxu0 %v3749_v11 }
  0xf2   : > { %3484 = vmatprep.subr.bf16.mxu0 %v3823_v3 }
  0xf3   : > { %2715 = vmatpush1.bf16.msra.mxu1 %v3763_v51  ;;  %v3779_v51 = vld [vmem:[%s4645_s13 + $0x34] ss:$20 sps:$4 sm:$0xff]  }
  0xf4   : > { %2716 = vmatprep.subr.bf16.mxu1 %v3769_v56 }
  0xf5   : > { %3485 = vmatpush3.bf16.msra.mxu0 %v3750_v12 }
  0xf6   : > { %3486 = vmatprep.subr.bf16.mxu0 %v3823_v3 }
  0xf7   : > { %2717 = vmatpush1.bf16.msra.mxu1 %v3767_v58 }
  0xf8   : > { %2751 = vmatprep.subr.bf16.mxu1 %v3773_v2 }
  0xf9   : > { %3487 = vmatpush3.bf16.msra.mxu0 %v3751_v13 }
  0xfa   : > { %3488 = vmatprep.subr.bf16.mxu0 %v3823_v3 }
  0xfd   : > { %3489 = vmatpush3.bf16.msra.mxu0 %v3752_v14 }
  0xfe   : > { %3490 = vmatprep.subr.bf16.mxu0 %v3823_v3 }
 0x101   : > { %3491 = vmatpush3.bf16.msra.mxu0 %v3753_v15 }
 0x102   : > { %3492 = vmatprep.subr.bf16.mxu0 %v3823_v3 }
 0x105   : > { %3493 = vmatpush3.bf16.msra.mxu0 %v3754_v16 }
 0x106   : > { %3498 = vmatprep.subr.bf16.mxu0 %v3823_v3 }
 0x108   : > { %v3216_v17 = vpop.f32.mrf.mxu0  ;;  %3495 = vmatmul.mubr.bf16.vlgmr.msra.gmra.mxu0 %v414_v21 }
 0x109   : > { %3506 = vmatprep.mubr.msk.bf16.mxu0 %vm3824_vm0, %v3823_v3  ;;  %3499 = vmatpush3.bf16.msra.mxu0 %v3758_v46 }
 0x10a   : > { %v3217_v20 = vpop.f32.mrf.mxu0  ;;  %v3238_v23 = vpop.f32.mrf.mxu1  ;;  %3500 = vmatprep.subr.bf16.mxu0 %v3823_v3 }
 0x10b   : > { %v3218_v22 = vadd.f32 %v3217_v20, %v3216_v17 }
 0x10c   : > { %v3219_v24 = vpop.f32.mrf.mxu0  ;;  %v3239_v26 = vpop.f32.mrf.mxu1 }
 0x10d   : > { %v2057_v25 = vadd.f32 %v3218_v22, %v2973_v19  ;;  %v3240_v27 = vadd.f32 %v3239_v26, %v3238_v23  ;;  %3501 = vmatpush3.bf16.msra.mxu0 %v3762_v49 }
 0x10e   : > { %v3220_v28 = vpop.f32.mrf.mxu0  ;;  %v3241_v29 = vpop.f32.mrf.mxu1  ;;  %3502 = vmatprep.subr.bf16.mxu0 %v3823_v3 }
 0x10f   : > { %v2097_v30 = vadd.f32 %v3240_v27, %v2057_v25 }
 0x110   : > { %v3242_v31 = vpop.f32.mrf.mxu1 }
 0x111   : > { %3503 = vmatpush3.bf16.msra.mxu0 %v3766_v52  ;;  %v3777_v52 = vld [vmem:[%s4645_s13 + $0x30] ss:$20 sps:$4 sm:$0xff]  }
 0x112   : > { %3504 = vmatprep.subr.bf16.mxu0 %v3823_v3 }
 0x115   : > { %3505 = vmatpush3.bf16.msra.mxu0 %v3770_v61 }
 0x128   : > { %v3260_v32 = vpop.f32.mrf.mxu0 }
 0x12a   : > { %v3261_v33 = vpop.f32.mrf.mxu0  ;;  %v3282_v35 = vpop.f32.mrf.mxu1 }
 0x12b   : > { %v3262_v34 = vadd.f32 %v3261_v33, %v3260_v32 }
 0x12c   : > { %v3263_v36 = vpop.f32.mrf.mxu0  ;;  %v3283_v38 = vpop.f32.mrf.mxu1 }
 0x12d   : > { %v2137_v37 = vadd.f32 %v3262_v34, %v2097_v30  ;;  %v3284_v39 = vadd.f32 %v3283_v38, %v3282_v35 }
 0x12e   : > { %v3264_v40 = vpop.f32.mrf.mxu0  ;;  %v3285_v41 = vpop.f32.mrf.mxu1 }
 0x12f   : > { %v2177_v42 = vadd.f32 %v3284_v39, %v2137_v37 }
 0x130   : > { %v3286_v43 = vpop.f32.mrf.mxu1 }
 0x148   : > { %v3304_v53 = vpop.f32.mrf.mxu0 }
 0x14a   : > { %v3305_v54 = vpop.f32.mrf.mxu0  ;;  %v3326_v55 = vpop.f32.mrf.mxu1 }
 0x14b   : > { %v3306_v57 = vadd.f32 %v3305_v54, %v3304_v53  ;;  %v3782_v53 = vld [vmem:[%s4645_s13 + $0xc] ss:$20 sps:$4 sm:$0xff]   ;;  %v3780_v54 = vld [vmem:[%s4645_s13 + $0x8] ss:$20 sps:$4 sm:$0xff]  }
 0x14c   : > { %v3307_v59 = vpop.f32.mrf.mxu0  ;;  %v3327_v60 = vpop.f32.mrf.mxu1 }
 0x14d   : > { %v2217_v62 = vadd.f32 %v3306_v57, %v2177_v42  ;;  %v3328_v63 = vadd.f32 %v3327_v60, %v3326_v55  ;;  %v2569_v55 = vlaneseq  ;;  %v2567_v59 = vld [vmem:[%s352_s16] sm:$0x1f] }
 0x14e   : > { %v3308_v0 = vpop.f32.mrf.mxu0  ;;  %v3329_v1 = vpop.f32.mrf.mxu1 }
 0x14f   : > { %v2257_v4 = vadd.f32 %v3328_v63, %v2217_v62  ;;  %v2570_v56 = vshrl.u32 %v2569_v55, 7 }
 0x150   : > { %v3330_v3 = vpop.f32.mrf.mxu1 }
 0x151   : > { %v2571_v57 = vsub.s32 0, %v2570_v56  ;;  %v2587_v58 = vsub.s32 4, %v2570_v56  ;;  %v2575_v60 = vsub.s32 1, %v2570_v56 }
 0x153   : > { %v2572_v61 = vrot.slane %v2567_v59, %v2571_v57  ;;  %v2588_v62 = vrot.slane %v2567_v59, %v2587_v58  ;;  %v2576_v63 = vrot.slane %v2567_v59, %v2575_v60 }
 0x168   : > { %v3348_v6 = vpop.f32.mrf.mxu0 }
 0x16a   : > { %v3349_v7 = vpop.f32.mrf.mxu0  ;;  %v3370_v9 = vpop.f32.mrf.mxu1 }
 0x16b   : > { %v3350_v8 = vadd.f32 %v3349_v7, %v3348_v6 }
 0x16c   : > { %v3351_v10 = vpop.f32.mrf.mxu0  ;;  %v3371_v12 = vpop.f32.mrf.mxu1 }
 0x16d   : > { %v2297_v11 = vadd.f32 %v3350_v8, %v2257_v4  ;;  %v3372_v13 = vadd.f32 %v3371_v12, %v3370_v9 }
 0x16e   : > { %v3352_v14 = vpop.f32.mrf.mxu0  ;;  %v3373_v15 = vpop.f32.mrf.mxu1 }
 0x16f   : > { %v2337_v16 = vadd.f32 %v3372_v13, %v2297_v11  ;;  %v2579_v14 = vsub.s32 2, %v2570_v56  ;;  %v2583_v15 = vsub.s32 3, %v2570_v56 }
 0x170   : > { %v3374_v17 = vpop.f32.mrf.mxu1 }
 0x171   : > { %v2584_v17 = vrot.slane %v2567_v59, %v2583_v15 }
 0x188   : > { %v3392_v18 = vpop.f32.mrf.mxu0 }
 0x18a   : > { %v3393_v19 = vpop.f32.mrf.mxu0  ;;  %v3414_v20 = vpop.f32.mrf.mxu1 }
 0x18b   : > { %v3394_v34 = vadd.f32 %v3393_v19, %v3392_v18 }
 0x18c   : > { %v3395_v21 = vpop.f32.mrf.mxu0  ;;  %v3415_v22 = vpop.f32.mrf.mxu1 }
 0x18d   : > { %v2377_v35 = vadd.f32 %v3394_v34, %v2337_v16  ;;  %v3416_v36 = vadd.f32 %v3415_v22, %v3414_v20  ;;  %v2580_v16 = vrot.slane %v2567_v59, %v2579_v14 }
 0x18e   : > { %v3396_v23 = vpop.f32.mrf.mxu0  ;;  %v3417_v24 = vpop.f32.mrf.mxu1 }
 0x18f   : > { %v2417_v38 = vadd.f32 %v3416_v36, %v2377_v35 }
 0x190   : > { %v3418_v25 = vpop.f32.mrf.mxu1 }
 0x1a8   : > { %v3436_v26 = vpop.f32.mrf.mxu0 }
 0x1aa   : > { %v3458_v27 = vpop.f32.mrf.mxu1  ;;  %v3437_v28 = vpop.f32.mrf.mxu0 }
 0x1ab   : > { %v3438_v37 = vadd.f32 %v3437_v28, %v3436_v26 }
 0x1ac   : > { %v3459_v29 = vpop.f32.mrf.mxu1  ;;  %v3439_v30 = vpop.f32.mrf.mxu0 }
 0x1ad   : > { %v2457_v39 = vadd.f32 %v3438_v37, %v2417_v38  ;;  %v3460_v40 = vadd.f32 %v3459_v29, %v3458_v27 }
 0x1ae   : > { %v3461_v31 = vpop.f32.mrf.mxu1  ;;  %v3440_v32 = vpop.f32.mrf.mxu0 }
 0x1af   : > { %v2497_v41 = vadd.f32 %v3460_v40, %v2457_v39 }
 0x1b0   : > { %v3462_v33 = vpop.f32.mrf.mxu1 }
 0x1c8   : > { %v2536_v42 = vpop.f32.mrf.mxu0 }
 0x1c9   : > { %v2537_v43 = vadd.f32 %v2536_v42, %v2497_v41 }
 0x1ca   : > { %v3496_v44 = vpop.f32.mrf.mxu0 }
 0x1cb   : > { %v2542_v46 = vpack.c.bf16 %v2537_v43, %v2537_v43 }
 0x1cc   : > { %v2539_v48 = vpop.f32.mrf.mxu0 }
 0x1cd   : > { %3194 = vmatmul.mubr.msk.bf16.vlgmr.msra.gmra.mxu1 %vm2698_vm1, %v2542_v46  ;;  %3507 = vmatmul.mubr.msk.bf16.vlgmr.msra.gmra.mxu0 %vm2698_vm1, %v2542_v46 }
 0x1ce   : > { %2752 = vmatpush1.bf16.msra.mxu1 %v3771_v45  ;;  %v3497_v49 = vpop.f32.mrf.mxu0  ;;  %2775 = vmatprep.mubr.bf16.mxu1 %v3825_v5 }
 0x1cf   : > { %2753 = vmatprep.subr.bf16.mxu1 %v3776_v47 }
 0x1d2   : > { %2754 = vmatpush1.bf16.msra.mxu1 %v3774_v50 }
 0x1d3   : > { %2755 = vmatprep.subr.bf16.mxu1 %v3779_v51 }
 0x1d6   : > { %2756 = vmatpush1.bf16.msra.mxu1 %v3777_v52 }
 0x1d7   : > { %2757 = vmatprep.subr.bf16.mxu1 %v3782_v53 }
 0x1da   : > { %2758 = vmatpush1.bf16.msra.mxu1 %v3780_v54 }
 0x1dd   : > { %3195 = vmatmul.mubr.msk.bf16.vlgmr.msra.gmra.mxu1 %vm2698_vm1, %v2542_v46 }
 0x28d   : > { %v2736_v0 = vpop.f32.mrf.mxu1  ;;  %v2818_v1 = vpop.f32.mrf.mxu0 }
 0x28e   : > { %v2737_v2 = vadd.f32 %v2736_v0, %v2572_v61  ;;  %v2819_v4 = vadd.f32 %v2818_v1, %v2588_v62 }
 0x28f   : > { %v2738_v3 = vpop.f32.mrf.mxu1  ;;  %v3508_v5 = vpop.f32.mrf.mxu0 }
 0x290   : > { %v2824_v6 = vmax.f32 %v2737_v2, 0.0  ;;  %v2828_v7 = vmax.f32 %v2819_v4, 0.0  ;;  %v2739_v8 = vadd.f32 %v2738_v3, %v2576_v63 }
 0x291   : > { %v2740_v9 = vpop.f32.mrf.mxu1  ;;  %v2821_v10 = vpop.f32.mrf.mxu0 }
 0x292   : > { %2829 = vst [vmem:[%s362_s25] sm:$0xff] %v2824_v6  ;;  %2833 = vst [vmem:[%s362_s25 + $0x20] sm:$0xff] %v2828_v7  ;;  %v2825_v11 = vmax.f32 %v2739_v8, 0.0 }
 0x293   : > { %v2741_v12 = vpop.f32.mrf.mxu1  ;;  %v3509_v13 = vpop.f32.mrf.mxu0 }
 0x294   : > { %2830 = vst [vmem:[%s362_s25 + $0x8] sm:$0xff] %v2825_v11 }
 0x29d   : > { %v2777_v18 = vpop.f32.mrf.mxu1 }
 0x29e   : > { %v2778_v19 = vadd.f32 %v2777_v18, %v2580_v16 }
 0x29f   : > { %v2779_v20 = vpop.f32.mrf.mxu1 }
 0x2a0   : > { %v2826_v21 = vmax.f32 %v2778_v19, 0.0  ;;  %v2780_v22 = vadd.f32 %v2779_v20, %v2584_v17 }
 0x2a1   : > { %v2781_v23 = vpop.f32.mrf.mxu1 }
 0x2a2   : > { %2831 = vst [vmem:[%s362_s25 + $0x10] sm:$0xff] %v2826_v21  ;;  %v2827_v24 = vmax.f32 %v2780_v22, 0.0 }
 0x2a3   : > { %v2782_v25 = vpop.f32.mrf.mxu1 }
 0x2a4   : > { %2832 = vst [vmem:[%s362_s25 + $0x18] sm:$0xff] %v2827_v24 }
 0x2a5 PF: > { %s15_s22 = sadd.s32 1, %s3821_s22   ;;  %s4701_s18 = smov %s3809_s19 }
 0x2a6   : > { %p12_p10 = scmp.ge.s32.totalorder %s15_s22, 7   ;;  %s4702_s19 = smov %s3891_s26 }
 0x2a7   : > { %s4703_s20 = smov %s3817_s21  ;;  %s4704_s21 = smov %s4706_s23 }
 0x2a8   :  { %14 = sbr.rel (!%p12_p10) target bundleno = 3 (0x3), region = 113 }

// kernel: autoencoder_forward.8
= control target key start
LH: loop header
LB: loop body
LE: loop exit
PB: predicated region body
PF: predicated region fallthrough
CT: control target
= control target key end

     0   :  { %s628_s12 = smov 0   ;;  %s630_s13 = smov 0   ;;  %s701_s0 = inlined_call_operand.vmem [shape: f32[200,128], index: 0, kind: input, shape index: {}]   ;;  %s702_s1 = inlined_call_operand.vmem [shape: bf16[128,128], index: 1, kind: input, shape index: {}]   ;;  %s703_s2 = inlined_call_operand.vmem [shape: f32[1,128], index: 2, kind: input, shape index: {}]   ;;  %s704_s3 = inlined_call_operand.vmem [shape: f32[200,128], index: 3, kind: output, shape index: {}]  }
   0x1   :  { %s632_s14 = smov 0  }
   0x2 LB: > { %s25_s15 = sadd.s32 1, %s600_s13  ;;  %p479_p0 = scmp.ge.s32.totalorder %s604_s14, 1  ;;  %s604_s14 = sphi %s632_s14, %s13_s14   ;;  %s600_s13 = sphi %s630_s13, %s706_s13   ;;  %s596_s12 = sphi %s628_s12, %s705_s12  }
   0x3   : > { %p27_p1 = scmp.ge.s32.totalorder %s25_s15, 5  ;;  %p169_p2 = scmp.lt.s32.totalorder %s604_s14, 6 }
   0x5   : > { %s708_s15 = smov (%p27_p1, %s25_s15), 0  ;;  %p170_p3 = pnand %p479_p0, %p169_p2 }
   0x6   : > { %s203_s22 = smul.u32 (!%p170_p3), 5, %s596_s12 }
   0x7   : > { %173 = sbr.rel (%p170_p3) target bundleno = 252 (0xfc), region = 32 }
   0x8   : > { %p204_p4 = scmp.lt.s32.totalorder (!%p170_p3), %s203_s22, 24 }
   0xc   : > { %v574_v0 = vld [vmem:[%s702_s1 + $0x38] sm:$0xff]   ;;  %v606_v1 = vmov 0.0   ;;  %v575_v2 = vld [vmem:[%s702_s1 + $0x30] sm:$0xff]   ;;  %vm607_vm0 = vmmov 0   ;;  %v576_v3 = vld [vmem:[%s702_s1 + $0x28] sm:$0xff]   ;;  %s710_s22 = smov (!%p204_p4, %s203_s22), 24 }
   0xd   : > { %504 = vmatprep.subr.bf16.mxu0 %v606_v1  ;;  %532 = vmatprep.subr.bf16.mxu1 %v606_v1  ;;  %v577_v4 = vld [vmem:[%s702_s1 + $0x20] sm:$0xff]   ;;  %v578_v5 = vld [vmem:[%s702_s1 + $0x18] sm:$0xff]   ;;  %v579_v6 = vld [vmem:[%s702_s1 + $0x10] sm:$0xff]   ;;  %s480_s29 = sshll.u32 %s710_s22, 3 }
   0xe   : > { %505 = vmatpush3.bf16.msra.mxu0 %v574_v0  ;;  %540 = vmatpush3.bf16.msra.mxu1 %v574_v0  ;;  %v580_v7 = vld [vmem:[%s702_s1 + $0x8] sm:$0xff]   ;;  %s207_s7 = scalar_lea.vmem %s701_s0, %s480_s29  ;;  %v581_v8 = vld [vmem:[%s702_s1] sm:$0xff]   ;;  %s223_s17 = scalar_lea.vmem %s704_s3, %s480_s29 }
   0xf   : > { %506 = vmatprep.subr.bf16.mxu0 %v606_v1  ;;  %533 = vmatprep.subr.bf16.mxu1 %v606_v1  ;;  %v226_v9 = vld [vmem:[%s207_s7] sm:$0xff]  ;;  %v227_v10 = vld [vmem:[%s207_s7 + $0x8] sm:$0xff]  ;;  %v228_v11 = vld [vmem:[%s207_s7 + $0x10] sm:$0xff] }
  0x10   : > { %520 = vmatprep.mubr.msk.bf16.mxu0 %vm607_vm0, %v606_v1  ;;  %524 = vmatprep.mubr.msk.bf16.mxu1 %vm607_vm0, %v606_v1  ;;  %v229_v12 = vld [vmem:[%s207_s7 + $0x18] sm:$0xff]  ;;  %v231_v13 = vpack.c.bf16 %v227_v10, %v226_v9  ;;  %v230_v15 = vld [vmem:[%s207_s7 + $0x20] sm:$0xff] }
  0x11   : > { %v232_v14 = vpack.c.bf16 %v229_v12, %v228_v11  ;;  %v233_v16 = vpack.c.bf16 %v230_v15, %v230_v15  ;;  %v482_v17 = vld [vmem:[%s703_s2] ss:$0 sm:$0xff] }
  0x12   : > { %507 = vmatpush3.bf16.msra.mxu0 %v575_v2  ;;  %541 = vmatpush3.bf16.msra.mxu1 %v575_v2 }
  0x13   : > { %508 = vmatprep.subr.bf16.mxu0 %v606_v1  ;;  %534 = vmatprep.subr.bf16.mxu1 %v606_v1 }
  0x16   : > { %509 = vmatpush3.bf16.msra.mxu0 %v576_v3  ;;  %542 = vmatpush3.bf16.msra.mxu1 %v576_v3 }
  0x17   : > { %510 = vmatprep.subr.bf16.mxu0 %v606_v1  ;;  %535 = vmatprep.subr.bf16.mxu1 %v606_v1 }
  0x1a   : > { %511 = vmatpush3.bf16.msra.mxu0 %v577_v4  ;;  %543 = vmatpush3.bf16.msra.mxu1 %v577_v4 }
  0x1b   : > { %512 = vmatprep.subr.bf16.mxu0 %v606_v1  ;;  %536 = vmatprep.subr.bf16.mxu1 %v606_v1 }
  0x1e   : > { %513 = vmatpush3.bf16.msra.mxu0 %v578_v5  ;;  %544 = vmatpush3.bf16.msra.mxu1 %v578_v5 }
  0x1f   : > { %514 = vmatprep.subr.bf16.mxu0 %v606_v1  ;;  %537 = vmatprep.subr.bf16.mxu1 %v606_v1 }
  0x22   : > { %515 = vmatpush3.bf16.msra.mxu0 %v579_v6  ;;  %545 = vmatpush3.bf16.msra.mxu1 %v579_v6 }
  0x23   : > { %516 = vmatprep.subr.bf16.mxu0 %v606_v1  ;;  %538 = vmatprep.subr.bf16.mxu1 %v606_v1 }
  0x26   : > { %517 = vmatpush3.bf16.msra.mxu0 %v580_v7  ;;  %546 = vmatpush3.bf16.msra.mxu1 %v580_v7 }
  0x27   : > { %518 = vmatprep.subr.bf16.mxu0 %v606_v1  ;;  %539 = vmatprep.subr.bf16.mxu1 %v606_v1 }
  0x2a   : > { %519 = vmatpush3.bf16.msra.mxu0 %v581_v8  ;;  %547 = vmatpush3.bf16.msra.mxu1 %v581_v8 }
  0x2d   : > { %521 = vmatmul.mubr.bf16.vlgmr.msra.gmra.mxu0 %v231_v13  ;;  %525 = vmatmul.mubr.bf16.vlgmr.msra.gmra.mxu1 %v232_v14 }
  0x2e   : > { %528 = vmatprep.mubr.msk.bf16.mxu1 %vm607_vm0, %v606_v1 }
  0x35   : > { %529 = vmatmul.mubr.bf16.gmra.mxu1 %v233_v16 }
  0xed   : > { %v339_v18 = vpop.f32.mrf.mxu0  ;;  %v347_v19 = vpop.f32.mrf.mxu1 }
  0xee   : > { %v340_v20 = vadd.f32 %v482_v17, %v339_v18  ;;  %v348_v21 = vadd.f32 %v482_v17, %v347_v19 }
  0xef   : > { %v522_v22 = vpop.f32.mrf.mxu0  ;;  %v526_v23 = vpop.f32.mrf.mxu1 }
  0xf0   : > { %v361_v24 = vmax.f32 %v340_v20, 0.0  ;;  %v363_v25 = vmax.f32 %v348_v21, 0.0 }
  0xf1   : > { %v342_v26 = vpop.f32.mrf.mxu0  ;;  %v350_v27 = vpop.f32.mrf.mxu1 }
  0xf2   : > { %366 = vst [vmem:[%s223_s17] sm:$0xff] %v361_v24  ;;  %368 = vst [vmem:[%s223_s17 + $0x10] sm:$0xff] %v363_v25  ;;  %v343_v28 = vadd.f32 %v482_v17, %v342_v26  ;;  %v351_v29 = vadd.f32 %v482_v17, %v350_v27 }
  0xf3   : > { %v523_v30 = vpop.f32.mrf.mxu0  ;;  %v527_v31 = vpop.f32.mrf.mxu1 }
  0xf4   : > { %v362_v32 = vmax.f32 %v343_v28, 0.0  ;;  %v364_v33 = vmax.f32 %v351_v29, 0.0 }
  0xf5   : > { %v355_v34 = vpop.f32.mrf.mxu1 }
  0xf6   : > { %367 = vst [vmem:[%s223_s17 + $0x8] sm:$0xff] %v362_v32  ;;  %369 = vst [vmem:[%s223_s17 + $0x18] sm:$0xff] %v364_v33  ;;  %v356_v35 = vadd.f32 %v482_v17, %v355_v34 }
  0xf7   : > { %v530_v36 = vpop.f32.mrf.mxu1 }
  0xf8   : > { %v365_v37 = vmax.f32 %v356_v35, 0.0 }
  0xf9   : > { %v358_v38 = vpop.f32.mrf.mxu1 }
  0xfa   : > { %370 = vst [vmem:[%s223_s17 + $0x20] sm:$0xff] %v365_v37 }
  0xfb   : > { %v531_v39 = vpop.f32.mrf.mxu1 }
  0xfc PF: > { %s13_s14 = sadd.s32 1, %s604_s14   ;;  %s705_s12 = smov %s600_s13 }
  0xfd   : > { %p10_p5 = scmp.ge.s32.totalorder %s13_s14, 7   ;;  %s706_s13 = smov %s708_s15 }
  0xff   :  { %12 = sbr.rel (!%p10_p5) target bundleno = 2 (0x2), region = 68 }

// kernel: autoencoder_forward.9
= control target key start
LH: loop header
LB: loop body
LE: loop exit
PB: predicated region body
PF: predicated region fallthrough
CT: control target
= control target key end

     0   :  { %s1021_s12 = smov 0   ;;  %s1023_s13 = smov 0   ;;  %s1204_s0 = inlined_call_operand.vmem [shape: f32[800,64], index: 0, kind: input, shape index: {}]   ;;  %s1205_s1 = inlined_call_operand.vmem [shape: bf16[64,128], index: 1, kind: input, shape index: {}]   ;;  %s1206_s2 = inlined_call_operand.vmem [shape: f32[1,128], index: 2, kind: input, shape index: {}]   ;;  %s1207_s3 = inlined_call_operand.vmem [shape: f32[800,128], index: 3, kind: output, shape index: {}]  }
   0x1   :  { %s1025_s14 = smov 0  }
   0x2 LB: > { %s25_s15 = sadd.s32 1, %s993_s13  ;;  %p737_p0 = scmp.ge.s32.totalorder %s997_s14, 1  ;;  %s997_s14 = sphi %s1025_s14, %s13_s14   ;;  %s993_s13 = sphi %s1023_s13, %s1209_s13   ;;  %s989_s12 = sphi %s1021_s12, %s1208_s12  }
   0x3   : > { %p27_p1 = scmp.ge.s32.totalorder %s25_s15, 4  ;;  %p169_p2 = scmp.lt.s32.totalorder %s997_s14, 5 }
   0x5   : > { %s1211_s15 = smov (%p27_p1, %s25_s15), 0  ;;  %p170_p3 = pnand %p737_p0, %p169_p2 }
   0x6   : > { %s203_s20 = smul.u32 (!%p170_p3), 25, %s989_s12 }
   0x7   : > { %173 = sbr.rel (%p170_p3) target bundleno = 313 (0x139), region = 32 }
   0x8   : > { %p204_p4 = scmp.lt.s32.totalorder (!%p170_p3), %s203_s20, 99 }
   0xc   : > { %v871_v0 = vld [vmem:[%s1205_s1 + $0x18] sm:$0xff]   ;;  %v999_v1 = vmov 0.0   ;;  %v872_v2 = vld [vmem:[%s1205_s1 + $0x10] sm:$0xff]   ;;  %vm1000_vm0 = vmmov 0   ;;  %v873_v3 = vld [vmem:[%s1205_s1 + $0x8] sm:$0xff]   ;;  %s1213_s20 = smov (!%p204_p4, %s203_s20), 99 }
   0xd   : > { %777 = vmatprep.subr.bf16.mxu0 %v999_v1  ;;  %837 = vmatprep.subr.bf16.mxu1 %v999_v1  ;;  %s738_s23 = sshll.u32 %s1213_s20, 3  ;;  %v874_v4 = vld [vmem:[%s1205_s1] sm:$0xff]   ;;  %vm303_vm1 = vcmask 523264  }
   0xe   : > { %778 = vmatpush3.bf16.msra.mxu0 %v871_v0  ;;  %841 = vmatpush3.bf16.msra.mxu1 %v871_v0  ;;  %s1069_s28 = scalar_lea.vmem %s1204_s0, %s738_s23  ;;  %v1136_v43 = vld [vmem:[%s1206_s2] ss:$0 sm:$0xff]  ;;  %s1160_s6 = scalar_lea.vmem %s1207_s3, %s738_s23 }
   0xf   : > { %779 = vmatprep.subr.bf16.mxu0 %v999_v1  ;;  %838 = vmatprep.subr.bf16.mxu1 %v999_v1  ;;  %v226_v5 = vld [vmem:[%s1069_s28] sm:$0xff]  ;;  %v227_v6 = vld [vmem:[%s1069_s28 + $0x8] sm:$0xff]  ;;  %v240_v7 = vld [vmem:[%s1069_s28 + $0x70] sm:$0xff] }
  0x10   : > { %785 = vmatprep.mubr.msk.bf16.mxu0 %vm1000_vm0, %v999_v1  ;;  %813 = vmatprep.mubr.msk.bf16.mxu1 %vm1000_vm0, %v999_v1  ;;  %v241_v8 = vld [vmem:[%s1069_s28 + $0x78] sm:$0xff]  ;;  %v251_v9 = vpack.c.bf16 %v227_v6, %v226_v5  ;;  %v228_v11 = vld [vmem:[%s1069_s28 + $0x10] sm:$0xff]  ;;  %v242_v13 = vld [vmem:[%s1069_s28 + $0x80] sm:$0xff] }
  0x11   : > { %v258_v10 = vpack.c.bf16 %v241_v8, %v240_v7  ;;  %v229_v12 = vld [vmem:[%s1069_s28 + $0x18] sm:$0xff]  ;;  %v243_v14 = vld [vmem:[%s1069_s28 + $0x88] sm:$0xff]  ;;  %v230_v17 = vld [vmem:[%s1069_s28 + $0x20] sm:$0xff] }
  0x12   : > { %780 = vmatpush3.bf16.msra.mxu0 %v872_v2  ;;  %842 = vmatpush3.bf16.msra.mxu1 %v872_v2  ;;  %v252_v15 = vpack.c.bf16 %v229_v12, %v228_v11  ;;  %v259_v16 = vpack.c.bf16 %v243_v14, %v242_v13  ;;  %v231_v18 = vld [vmem:[%s1069_s28 + $0x28] sm:$0xff]  ;;  %v244_v19 = vld [vmem:[%s1069_s28 + $0x90] sm:$0xff]  ;;  %v245_v20 = vld [vmem:[%s1069_s28 + $0x98] sm:$0xff] }
  0x13   : > { %781 = vmatprep.subr.bf16.mxu0 %v999_v1  ;;  %839 = vmatprep.subr.bf16.mxu1 %v999_v1  ;;  %v253_v21 = vpack.c.bf16 %v231_v18, %v230_v17  ;;  %v260_v22 = vpack.c.bf16 %v245_v20, %v244_v19  ;;  %v232_v23 = vld [vmem:[%s1069_s28 + $0x30] sm:$0xff]  ;;  %v233_v24 = vld [vmem:[%s1069_s28 + $0x38] sm:$0xff]  ;;  %v246_v25 = vld [vmem:[%s1069_s28 + $0xa0] sm:$0xff] }
  0x14   : > { %v247_v26 = vld [vmem:[%s1069_s28 + $0xa8] sm:$0xff]  ;;  %v254_v27 = vpack.c.bf16 %v233_v24, %v232_v23  ;;  %v234_v29 = vld [vmem:[%s1069_s28 + $0x40] sm:$0xff]  ;;  %v248_v31 = vld [vmem:[%s1069_s28 + $0xb0] sm:$0xff] }
  0x15   : > { %v261_v28 = vpack.c.bf16 %v247_v26, %v246_v25  ;;  %v235_v30 = vld [vmem:[%s1069_s28 + $0x48] sm:$0xff]  ;;  %v249_v32 = vld [vmem:[%s1069_s28 + $0xb8] sm:$0xff]  ;;  %v236_v35 = vld [vmem:[%s1069_s28 + $0x50] sm:$0xff] }
  0x16   : > { %782 = vmatpush3.bf16.msra.mxu0 %v873_v3  ;;  %843 = vmatpush3.bf16.msra.mxu1 %v873_v3  ;;  %v255_v33 = vpack.c.bf16 %v235_v30, %v234_v29  ;;  %v262_v34 = vpack.c.bf16 %v249_v32, %v248_v31  ;;  %v237_v36 = vld [vmem:[%s1069_s28 + $0x58] sm:$0xff]  ;;  %v250_v37 = vld [vmem:[%s1069_s28 + $0xc0] sm:$0xff]  ;;  %v239_v41 = vld [vmem:[%s1069_s28 + $0x68] sm:$0xff] }
  0x17   : > { %783 = vmatprep.subr.bf16.mxu0 %v999_v1  ;;  %840 = vmatprep.subr.bf16.mxu1 %v999_v1  ;;  %v256_v38 = vpack.c.bf16 %v237_v36, %v236_v35  ;;  %v263_v39 = vpack.c.bf16 %v250_v37, %v250_v37  ;;  %v238_v40 = vld [vmem:[%s1069_s28 + $0x60] sm:$0xff] }
  0x18   : > { %v257_v42 = vpack.c.bf16 %v239_v41, %v238_v40 }
  0x1a   : > { %784 = vmatpush3.bf16.msra.mxu0 %v874_v4  ;;  %844 = vmatpush3.bf16.msra.mxu1 %v874_v4 }
  0x1d   : > { %786 = vmatmul.mubr.msk.bf16.vlgmr.msra.gmra.mxu0 %vm303_vm1, %v251_v9  ;;  %814 = vmatmul.mubr.msk.bf16.vlgmr.msra.gmra.mxu1 %vm303_vm1, %v258_v10 }
  0x1e   : > { %789 = vmatprep.mubr.msk.bf16.mxu0 %vm1000_vm0, %v999_v1  ;;  %817 = vmatprep.mubr.msk.bf16.mxu1 %vm1000_vm0, %v999_v1 }
  0x25   : > { %790 = vmatmul.mubr.msk.bf16.gmra.mxu0 %vm303_vm1, %v252_v15  ;;  %818 = vmatmul.mubr.msk.bf16.gmra.mxu1 %vm303_vm1, %v259_v16 }
  0x26   : > { %793 = vmatprep.mubr.msk.bf16.mxu0 %vm1000_vm0, %v999_v1  ;;  %821 = vmatprep.mubr.msk.bf16.mxu1 %vm1000_vm0, %v999_v1 }
  0x2d   : > { %794 = vmatmul.mubr.msk.bf16.gmra.mxu0 %vm303_vm1, %v253_v21  ;;  %822 = vmatmul.mubr.msk.bf16.gmra.mxu1 %vm303_vm1, %v260_v22 }
  0x2e   : > { %797 = vmatprep.mubr.msk.bf16.mxu0 %vm1000_vm0, %v999_v1  ;;  %825 = vmatprep.mubr.msk.bf16.mxu1 %vm1000_vm0, %v999_v1 }
  0x35   : > { %798 = vmatmul.mubr.msk.bf16.gmra.mxu0 %vm303_vm1, %v254_v27  ;;  %826 = vmatmul.mubr.msk.bf16.gmra.mxu1 %vm303_vm1, %v261_v28 }
  0x36   : > { %801 = vmatprep.mubr.msk.bf16.mxu0 %vm1000_vm0, %v999_v1  ;;  %829 = vmatprep.mubr.msk.bf16.mxu1 %vm1000_vm0, %v999_v1 }
  0x3d   : > { %802 = vmatmul.mubr.msk.bf16.gmra.mxu0 %vm303_vm1, %v255_v33  ;;  %830 = vmatmul.mubr.msk.bf16.gmra.mxu1 %vm303_vm1, %v262_v34 }
  0x3e   : > { %805 = vmatprep.mubr.msk.bf16.mxu0 %vm1000_vm0, %v999_v1  ;;  %833 = vmatprep.mubr.msk.bf16.mxu1 %vm1000_vm0, %v999_v1 }
  0x45   : > { %806 = vmatmul.mubr.msk.bf16.gmra.mxu0 %vm303_vm1, %v256_v38  ;;  %834 = vmatmul.mubr.msk.bf16.gmra.mxu1 %vm303_vm1, %v263_v39 }
  0x46   : > { %809 = vmatprep.mubr.msk.bf16.mxu0 %vm1000_vm0, %v999_v1 }
  0x4d   : > { %810 = vmatmul.mubr.msk.bf16.gmra.mxu0 %vm303_vm1, %v257_v42 }
  0xdd   : > { %v377_v44 = vpop.f32.mrf.mxu0  ;;  %v433_v45 = vpop.f32.mrf.mxu1 }
  0xde   : > { %v378_v46 = vadd.f32 %v1136_v43, %v377_v44  ;;  %v434_v47 = vadd.f32 %v1136_v43, %v433_v45 }
  0xdf   : > { %v787_v48 = vpop.f32.mrf.mxu0  ;;  %v815_v49 = vpop.f32.mrf.mxu1 }
  0xe0   : > { %v479_v50 = vsub.f32 0.0, %v378_v46  ;;  %v493_v51 = vsub.f32 0.0, %v434_v47 }
  0xe1   : > { %v380_v52 = vpop.f32.mrf.mxu0  ;;  %v436_v53 = vpop.f32.mrf.mxu1 }
  0xe2   : > { %v504_v54 = vmul.f32 1.442695, %v479_v50  ;;  %v381_v55 = vadd.f32 %v1136_v43, %v380_v52  ;;  %v532_v56 = vmul.f32 1.442695, %v493_v51  ;;  %v437_v57 = vadd.f32 %v1136_v43, %v436_v53 }
  0xe3   : > { %v788_v58 = vpop.f32.mrf.mxu0  ;;  %v816_v59 = vpop.f32.mrf.mxu1 }
  0xe4   : > { %875 = vpow2.f32 %v504_v54  ;;  %v480_v60 = vsub.f32 0.0, %v381_v55  ;;  %v494_v61 = vsub.f32 0.0, %v437_v57 }
  0xe5   : > { %877 = vpow2.f32 %v532_v56  ;;  %v385_v62 = vpop.f32.mrf.mxu0  ;;  %v441_v63 = vpop.f32.mrf.mxu1 }
  0xe6   : > { %v506_v0 = vmul.f32 1.442695, %v480_v60  ;;  %v386_v1 = vadd.f32 %v1136_v43, %v385_v62  ;;  %v534_v2 = vmul.f32 1.442695, %v494_v61  ;;  %v442_v3 = vadd.f32 %v1136_v43, %v441_v63 }
  0xe7   : > { %v791_v4 = vpop.f32.mrf.mxu0  ;;  %v819_v5 = vpop.f32.mrf.mxu1 }
  0xe8   : > { %879 = vpow2.f32 %v506_v0  ;;  %v481_v6 = vsub.f32 0.0, %v386_v1  ;;  %v495_v7 = vsub.f32 0.0, %v442_v3 }
  0xe9   : > { %881 = vpow2.f32 %v534_v2  ;;  %v388_v8 = vpop.f32.mrf.mxu0  ;;  %v444_v9 = vpop.f32.mrf.mxu1 }
  0xea   : > { %v508_v10 = vmul.f32 1.442695, %v481_v6  ;;  %v389_v11 = vadd.f32 %v1136_v43, %v388_v8  ;;  %v536_v12 = vmul.f32 1.442695, %v495_v7  ;;  %v445_v13 = vadd.f32 %v1136_v43, %v444_v9 }
  0xeb   : > { %v792_v14 = vpop.f32.mrf.mxu0  ;;  %v820_v15 = vpop.f32.mrf.mxu1 }
  0xec   : > { %883 = vpow2.f32 %v508_v10  ;;  %v482_v16 = vsub.f32 0.0, %v389_v11  ;;  %v496_v17 = vsub.f32 0.0, %v445_v13 }
  0xed   : > { %885 = vpow2.f32 %v536_v12  ;;  %v393_v18 = vpop.f32.mrf.mxu0  ;;  %v449_v19 = vpop.f32.mrf.mxu1 }
  0xee   : > { %v510_v20 = vmul.f32 1.442695, %v482_v16  ;;  %v394_v21 = vadd.f32 %v1136_v43, %v393_v18  ;;  %v538_v22 = vmul.f32 1.442695, %v496_v17  ;;  %v450_v23 = vadd.f32 %v1136_v43, %v449_v19 }
  0xef   : > { %v795_v24 = vpop.f32.mrf.mxu0  ;;  %v823_v25 = vpop.f32.mrf.mxu1 }
  0xf0   : > { %887 = vpow2.f32 %v510_v20  ;;  %v483_v26 = vsub.f32 0.0, %v394_v21  ;;  %v497_v27 = vsub.f32 0.0, %v450_v23 }
  0xf1   : > { %v876_v28 = vpop.eup %875  ;;  %889 = vpow2.f32 %v538_v22  ;;  %v396_v29 = vpop.f32.mrf.mxu0 }
  0xf2   : > { %v452_v30 = vpop.f32.mrf.mxu1  ;;  %v878_v31 = vpop.eup %877  ;;  %v554_v32 = vadd.f32 1.0, %v876_v28  ;;  %v512_v33 = vmul.f32 1.442695, %v483_v26  ;;  %v397_v34 = vadd.f32 %v1136_v43, %v396_v29  ;;  %v540_v37 = vmul.f32 1.442695, %v497_v27 }
  0xf3   : > { %v568_v35 = vadd.f32 1.0, %v878_v31  ;;  %v796_v36 = vpop.f32.mrf.mxu0  ;;  %v453_v38 = vadd.f32 %v1136_v43, %v452_v30 }
  0xf4   : > { %v824_v39 = vpop.f32.mrf.mxu1  ;;  %891 = vrcp.f32 %v554_v32  ;;  %v484_v40 = vsub.f32 0.0, %v397_v34 }
  0xf5   : > { %v880_v41 = vpop.eup %879  ;;  %893 = vrcp.f32 %v568_v35  ;;  %v401_v42 = vpop.f32.mrf.mxu0  ;;  %v498_v44 = vsub.f32 0.0, %v453_v38 }
  0xf6   : > { %v457_v45 = vpop.f32.mrf.mxu1  ;;  %v882_v46 = vpop.eup %881  ;;  %v555_v47 = vadd.f32 1.0, %v880_v41  ;;  %895 = vpow2.f32 %v512_v33  ;;  %v514_v48 = vmul.f32 1.442695, %v484_v40  ;;  %v402_v49 = vadd.f32 %v1136_v43, %v401_v42 }
  0xf7   : > { %v569_v50 = vadd.f32 1.0, %v882_v46  ;;  %897 = vpow2.f32 %v540_v37  ;;  %v799_v51 = vpop.f32.mrf.mxu0  ;;  %v542_v52 = vmul.f32 1.442695, %v498_v44  ;;  %v458_v53 = vadd.f32 %v1136_v43, %v457_v45 }
  0xf8   : > { %v827_v54 = vpop.f32.mrf.mxu1  ;;  %899 = vrcp.f32 %v555_v47  ;;  %v485_v55 = vsub.f32 0.0, %v402_v49 }
  0xf9   : > { %v884_v56 = vpop.eup %883  ;;  %901 = vrcp.f32 %v569_v50  ;;  %v404_v57 = vpop.f32.mrf.mxu0  ;;  %v499_v58 = vsub.f32 0.0, %v458_v53 }
  0xfa   : > { %v460_v59 = vpop.f32.mrf.mxu1  ;;  %v886_v60 = vpop.eup %885  ;;  %v556_v61 = vadd.f32 1.0, %v884_v56  ;;  %903 = vpow2.f32 %v514_v48  ;;  %v516_v62 = vmul.f32 1.442695, %v485_v55  ;;  %v405_v63 = vadd.f32 %v1136_v43, %v404_v57 }
  0xfb   : > { %v570_v0 = vadd.f32 1.0, %v886_v60  ;;  %905 = vpow2.f32 %v542_v52  ;;  %v800_v1 = vpop.f32.mrf.mxu0  ;;  %v544_v2 = vmul.f32 1.442695, %v499_v58  ;;  %v461_v3 = vadd.f32 %v1136_v43, %v460_v59 }
  0xfc   : > { %v828_v4 = vpop.f32.mrf.mxu1  ;;  %907 = vrcp.f32 %v556_v61  ;;  %v486_v5 = vsub.f32 0.0, %v405_v63 }
  0xfd   : > { %v888_v6 = vpop.eup %887  ;;  %909 = vrcp.f32 %v570_v0  ;;  %v409_v7 = vpop.f32.mrf.mxu0  ;;  %v500_v8 = vsub.f32 0.0, %v461_v3 }
  0xfe   : > { %v465_v9 = vpop.f32.mrf.mxu1  ;;  %v890_v10 = vpop.eup %889  ;;  %v557_v11 = vadd.f32 1.0, %v888_v6  ;;  %911 = vpow2.f32 %v516_v62  ;;  %v518_v12 = vmul.f32 1.442695, %v486_v5  ;;  %v410_v13 = vadd.f32 %v1136_v43, %v409_v7 }
  0xff   : > { %v571_v14 = vadd.f32 1.0, %v890_v10  ;;  %913 = vpow2.f32 %v544_v2  ;;  %v803_v15 = vpop.f32.mrf.mxu0  ;;  %v546_v16 = vmul.f32 1.442695, %v500_v8  ;;  %v466_v17 = vadd.f32 %v1136_v43, %v465_v9 }
 0x100   : > { %v831_v18 = vpop.f32.mrf.mxu1  ;;  %915 = vrcp.f32 %v557_v11  ;;  %v487_v19 = vsub.f32 0.0, %v410_v13 }
 0x101   : > { %v892_v20 = vpop.eup %891  ;;  %917 = vrcp.f32 %v571_v14  ;;  %v412_v21 = vpop.f32.mrf.mxu0  ;;  %v501_v22 = vsub.f32 0.0, %v466_v17 }
 0x102   : > { %v468_v23 = vpop.f32.mrf.mxu1  ;;  %v894_v24 = vpop.eup %893  ;;  %604 = vst [vmem:[%s1160_s6] sm:$0xff] %v892_v20  ;;  %919 = vpow2.f32 %v518_v12  ;;  %v520_v25 = vmul.f32 1.442695, %v487_v19  ;;  %v413_v26 = vadd.f32 %v1136_v43, %v412_v21 }
 0x103   : > { %v469_v27 = vadd.f32 %v1136_v43, %v468_v23  ;;  %v896_v28 = vpop.eup %895  ;;  %618 = vst [vmem:[%s1160_s6 + $0x70] sm:$0xff] %v894_v24  ;;  %921 = vpow2.f32 %v546_v16  ;;  %v804_v29 = vpop.f32.mrf.mxu0  ;;  %v548_v30 = vmul.f32 1.442695, %v501_v22 }
 0x104   : > { %v832_v31 = vpop.f32.mrf.mxu1  ;;  %v898_v32 = vpop.eup %897  ;;  %v558_v33 = vadd.f32 1.0, %v896_v28  ;;  %923 = vpow2.f32 %v520_v25  ;;  %v488_v34 = vsub.f32 0.0, %v413_v26 }
 0x105   : > { %v502_v35 = vsub.f32 0.0, %v469_v27  ;;  %v900_v36 = vpop.eup %899  ;;  %v572_v37 = vadd.f32 1.0, %v898_v32  ;;  %925 = vpow2.f32 %v548_v30  ;;  %v417_v38 = vpop.f32.mrf.mxu0 }
 0x106   : > { %v473_v39 = vpop.f32.mrf.mxu1  ;;  %v902_v40 = vpop.eup %901  ;;  %605 = vst [vmem:[%s1160_s6 + $0x8] sm:$0xff] %v900_v36  ;;  %927 = vrcp.f32 %v558_v33  ;;  %v522_v41 = vmul.f32 1.442695, %v488_v34  ;;  %v418_v42 = vadd.f32 %v1136_v43, %v417_v38 }
 0x107   : > { %v550_v44 = vmul.f32 1.442695, %v502_v35  ;;  %v904_v45 = vpop.eup %903  ;;  %619 = vst [vmem:[%s1160_s6 + $0x78] sm:$0xff] %v902_v40  ;;  %929 = vrcp.f32 %v572_v37  ;;  %v807_v46 = vpop.f32.mrf.mxu0  ;;  %v474_v47 = vadd.f32 %v1136_v43, %v473_v39 }
 0x108   : > { %v835_v48 = vpop.f32.mrf.mxu1  ;;  %v906_v49 = vpop.eup %905  ;;  %v559_v50 = vadd.f32 1.0, %v904_v45  ;;  %931 = vpow2.f32 %v522_v41  ;;  %v489_v51 = vsub.f32 0.0, %v418_v42 }
 0x109   : > { %v908_v52 = vpop.eup %907  ;;  %v573_v53 = vadd.f32 1.0, %v906_v49  ;;  %933 = vpow2.f32 %v550_v44  ;;  %v420_v54 = vpop.f32.mrf.mxu0  ;;  %v503_v55 = vsub.f32 0.0, %v474_v47 }
 0x10a   : > { %v476_v56 = vpop.f32.mrf.mxu1  ;;  %v910_v57 = vpop.eup %909  ;;  %606 = vst [vmem:[%s1160_s6 + $0x10] sm:$0xff] %v908_v52  ;;  %935 = vrcp.f32 %v559_v50  ;;  %v524_v58 = vmul.f32 1.442695, %v489_v51  ;;  %v421_v59 = vadd.f32 %v1136_v43, %v420_v54 }
 0x10b   : > { %v912_v60 = vpop.eup %911  ;;  %620 = vst [vmem:[%s1160_s6 + $0x80] sm:$0xff] %v910_v57  ;;  %937 = vrcp.f32 %v573_v53  ;;  %v808_v61 = vpop.f32.mrf.mxu0  ;;  %v552_v62 = vmul.f32 1.442695, %v503_v55 }
 0x10c   : > { %v836_v63 = vpop.f32.mrf.mxu1  ;;  %v914_v0 = vpop.eup %913  ;;  %v560_v1 = vadd.f32 1.0, %v912_v60  ;;  %939 = vpow2.f32 %v524_v58  ;;  %v490_v2 = vsub.f32 0.0, %v421_v59 }
 0x10d   : > { %v916_v3 = vpop.eup %915  ;;  %v574_v4 = vadd.f32 1.0, %v914_v0  ;;  %941 = vpow2.f32 %v552_v62  ;;  %v425_v5 = vpop.f32.mrf.mxu0 }
 0x10e   : > { %v918_v6 = vpop.eup %917  ;;  %607 = vst [vmem:[%s1160_s6 + $0x18] sm:$0xff] %v916_v3  ;;  %943 = vrcp.f32 %v560_v1  ;;  %v526_v7 = vmul.f32 1.442695, %v490_v2  ;;  %v426_v8 = vadd.f32 %v1136_v43, %v425_v5 }
 0x10f   : > { %v920_v9 = vpop.eup %919  ;;  %621 = vst [vmem:[%s1160_s6 + $0x88] sm:$0xff] %v918_v6  ;;  %945 = vrcp.f32 %v574_v4  ;;  %v811_v10 = vpop.f32.mrf.mxu0 }
 0x110   : > { %v922_v11 = vpop.eup %921  ;;  %v561_v12 = vadd.f32 1.0, %v920_v9  ;;  %947 = vpow2.f32 %v526_v7  ;;  %v491_v13 = vsub.f32 0.0, %v426_v8 }
 0x111   : > { %v924_v14 = vpop.eup %923  ;;  %v575_v15 = vadd.f32 1.0, %v922_v11  ;;  %v428_v16 = vpop.f32.mrf.mxu0 }
 0x112   : > { %v926_v17 = vpop.eup %925  ;;  %949 = vrcp.f32 %v561_v12  ;;  %v562_v18 = vadd.f32 1.0, %v924_v14  ;;  %v528_v19 = vmul.f32 1.442695, %v491_v13  ;;  %v429_v20 = vadd.f32 %v1136_v43, %v428_v16 }
 0x113   : > { %v928_v21 = vpop.eup %927  ;;  %951 = vrcp.f32 %v575_v15  ;;  %v576_v22 = vadd.f32 1.0, %v926_v17  ;;  %v812_v23 = vpop.f32.mrf.mxu0 }
 0x114   : > { %v930_v24 = vpop.eup %929  ;;  %608 = vst [vmem:[%s1160_s6 + $0x20] sm:$0xff] %v928_v21  ;;  %953 = vrcp.f32 %v562_v18  ;;  %v492_v25 = vsub.f32 0.0, %v429_v20 }
 0x115   : > { %v932_v26 = vpop.eup %931  ;;  %622 = vst [vmem:[%s1160_s6 + $0x90] sm:$0xff] %v930_v24  ;;  %955 = vrcp.f32 %v576_v22 }
 0x116   : > { %v934_v27 = vpop.eup %933  ;;  %v563_v28 = vadd.f32 1.0, %v932_v26  ;;  %957 = vpow2.f32 %v528_v19  ;;  %v530_v29 = vmul.f32 1.442695, %v492_v25 }
 0x117   : > { %v936_v30 = vpop.eup %935  ;;  %v577_v43 = vadd.f32 1.0, %v934_v27 }
 0x118   : > { %v938_v31 = vpop.eup %937  ;;  %609 = vst [vmem:[%s1160_s6 + $0x28] sm:$0xff] %v936_v30  ;;  %959 = vrcp.f32 %v563_v28 }
 0x119   : > { %v940_v32 = vpop.eup %939  ;;  %623 = vst [vmem:[%s1160_s6 + $0x98] sm:$0xff] %v938_v31  ;;  %961 = vrcp.f32 %v577_v43 }
 0x11a   : > { %v942_v33 = vpop.eup %941  ;;  %v564_v34 = vadd.f32 1.0, %v940_v32  ;;  %963 = vpow2.f32 %v530_v29 }
 0x11b   : > { %v944_v35 = vpop.eup %943  ;;  %v578_v36 = vadd.f32 1.0, %v942_v33 }
 0x11c   : > { %v946_v37 = vpop.eup %945  ;;  %610 = vst [vmem:[%s1160_s6 + $0x30] sm:$0xff] %v944_v35  ;;  %965 = vrcp.f32 %v564_v34 }
 0x11d   : > { %v948_v38 = vpop.eup %947  ;;  %624 = vst [vmem:[%s1160_s6 + $0xa0] sm:$0xff] %v946_v37  ;;  %967 = vrcp.f32 %v578_v36 }
 0x11e   : > { %v565_v39 = vadd.f32 1.0, %v948_v38 }
 0x11f   : > { %v950_v40 = vpop.eup %949 }
 0x120   : > { %v952_v41 = vpop.eup %951  ;;  %611 = vst [vmem:[%s1160_s6 + $0x38] sm:$0xff] %v950_v40  ;;  %969 = vrcp.f32 %v565_v39 }
 0x121   : > { %v954_v42 = vpop.eup %953  ;;  %625 = vst [vmem:[%s1160_s6 + $0xa8] sm:$0xff] %v952_v41 }
 0x122   : > { %v956_v44 = vpop.eup %955  ;;  %612 = vst [vmem:[%s1160_s6 + $0x40] sm:$0xff] %v954_v42 }
 0x123   : > { %v958_v45 = vpop.eup %957  ;;  %626 = vst [vmem:[%s1160_s6 + $0xb0] sm:$0xff] %v956_v44 }
 0x124   : > { %v566_v46 = vadd.f32 1.0, %v958_v45 }
 0x125   : > { %v960_v47 = vpop.eup %959 }
 0x126   : > { %v962_v48 = vpop.eup %961  ;;  %613 = vst [vmem:[%s1160_s6 + $0x48] sm:$0xff] %v960_v47  ;;  %971 = vrcp.f32 %v566_v46 }
 0x127   : > { %v964_v49 = vpop.eup %963  ;;  %627 = vst [vmem:[%s1160_s6 + $0xb8] sm:$0xff] %v962_v48 }
 0x128   : > { %v567_v50 = vadd.f32 1.0, %v964_v49 }
 0x129   : > { %v966_v51 = vpop.eup %965 }
 0x12a   : > { %v968_v52 = vpop.eup %967  ;;  %614 = vst [vmem:[%s1160_s6 + $0x50] sm:$0xff] %v966_v51  ;;  %973 = vrcp.f32 %v567_v50 }
 0x12b   : > { %628 = vst [vmem:[%s1160_s6 + $0xc0] sm:$0xff] %v968_v52 }
 0x12d   : > { %v970_v53 = vpop.eup %969 }
 0x12e   : > { %615 = vst [vmem:[%s1160_s6 + $0x58] sm:$0xff] %v970_v53 }
 0x133   : > { %v972_v54 = vpop.eup %971 }
 0x134   : > { %616 = vst [vmem:[%s1160_s6 + $0x60] sm:$0xff] %v972_v54 }
 0x137   : > { %v974_v55 = vpop.eup %973 }
 0x138   : > { %617 = vst [vmem:[%s1160_s6 + $0x68] sm:$0xff] %v974_v55 }
 0x139 PF: > { %s13_s14 = sadd.s32 1, %s997_s14   ;;  %s1208_s12 = smov %s993_s13 }
 0x13a   : > { %p10_p5 = scmp.ge.s32.totalorder %s13_s14, 6   ;;  %s1209_s13 = smov %s1211_s15 }
 0x13c   :  { %12 = sbr.rel (!%p10_p5) target bundleno = 2 (0x2), region = 68 }

</bundles_post_ra>
